<compile_context>
chip_gen: v6e
topology: v6e:2x2x1
jax: 0.10.0
libtpu: 0.0.40
codegen_flags: <defaults>
</compile_context>

<pallas_src>
import functools
import math

import jax
import jax.numpy as jnp
from jax import lax
from jax.experimental import pallas as pl
from jax.experimental.pallas import tpu as pltpu


def _prenorm_mlp_kernel(x_ref, w1_ref, b1_ref, w2_ref, b2_ref, o_ref,
                        xhat_ref, acc_ref, *, eps):
    """Grid = (M tiles, H chunks).  x / xhat / acc stay resident across the H
    axis; W1/b1/W2 chunks stream along it and fc2 partial sums accumulate."""
    hk = pl.program_id(1)

    @pl.when(hk == 0)
    def _():
        # ---- LayerNorm (the PreNorm part), f32, single-pass statistics ----
        x = x_ref[...].astype(jnp.float32)                    # [TM, D]
        m = jnp.mean(x, axis=-1, keepdims=True)
        v = jnp.mean(x * x, axis=-1, keepdims=True) - m * m
        v = jnp.maximum(v, 0.0)
        xhat = (x - m) * lax.rsqrt(v + eps)
        # gamma/beta were folded into W1/b1 by the wrapper (exact algebra), so
        # xhat feeds fc1 directly.  Stored in the weight dtype so bf16 weights
        # hit the full-rate MXU path.
        xhat_ref[...] = xhat.astype(xhat_ref.dtype)
        acc_ref[...] = jnp.zeros_like(acc_ref)

    # ---- fc1 chunk: [TM, D] @ [D, TH]  (f32 accumulation on the MXU) ----
    h = jnp.dot(xhat_ref[...], w1_ref[...], preferred_element_type=jnp.float32)
    h = h + b1_ref[...].astype(jnp.float32)
    # exact erf-GELU (matches torch.nn.functional.gelu default)
    h = 0.5 * h * (1.0 + lax.erf(h * (1.0 / math.sqrt(2.0))))
    # ---- fc2 chunk: [TM, TH] @ [TH, D], accumulated over H chunks in f32 ----
    acc_ref[...] += jnp.dot(h.astype(w2_ref.dtype), w2_ref[...],
                            preferred_element_type=jnp.float32)

    @pl.when(hk == pl.num_programs(1) - 1)
    def _():
        o_ref[...] = (acc_ref[...]
                      + b2_ref[...].astype(jnp.float32)).astype(o_ref.dtype)
    # TODO(synk): nonzero dropout inside the wrapped fn would need
    # pltpu.prng_seed / prng_random_bits masking; p=0.0 here -> identity.


def _vmem_capacity_bytes():
    try:
        return int(pltpu.get_tpu_info().vmem_capacity_bytes)
    except Exception:
        return 64 * 1024 * 1024   # conservative: v7x per-TensorCore VMEM


def _pick_tm(m, block_m):
    """Largest legal M tile: multiple of 8 (or full M), divisor of M when
    possible (no ragged masked last tile), preferring an even >=2-tile grid so
    both v7x TensorCores get work; harmless on single-TC v5e/v6e."""
    block_m = max(8, (block_m // 8) * 8)
    cands = [tm for tm in range(8, min(block_m, m) + 1, 8) if m % tm == 0]
    for need_even, need_multi in ((True, True), (False, True), (False, False)):
        for tm in reversed(cands):
            n = m // tm
            if need_multi and n < 2:
                continue
            if need_even and n % 2:
                continue
            return tm
    if m <= block_m:
        return m               # full-M block is legal even if M % 8 != 0
    return block_m             # ragged last tile, masked on store


def _pick_th(hdim, tm, d, w_bytes, act_bytes, budget):
    """Largest H chunk (multiple of 128, or full H) whose working set fits the
    VMEM budget; chunks stream along the trailing 'arbitrary' grid axis."""
    def est(th):
        wts = 2 * (d * th + th * d + th + d) * w_bytes   # double-buffered streams
        xio = 2 * 2 * tm * d * act_bytes                 # x in + out, double-buffered
        scr = tm * d * (4 + w_bytes)                     # f32 acc + xhat scratch
        live = 2 * tm * th * 4                           # f32 fc1/GELU intermediates
        return wts + xio + scr + live
    cands = sorted({hdim} | {c for c in range(128, hdim, 128) if hdim % c == 0},
                   reverse=True)
    for th in cands:
        if est(th) <= budget:
            return th
    return cands[-1]


def prenorm_mlp_forward(x, gamma, beta, w1, b1, w2, b2, *, eps=1e-5,
                        block_m=512):
    """PreNorm: LayerNorm(D) then fc1 -> erf-GELU -> fc2, fused in one kernel.

    x: [B, S, D]; gamma/beta: [D]; w1: [D, H]; b1: [H]; w2: [H, D]; b2: [D].
    Weights may be bf16 (recommended on v6e/v7x): activations are cast to the
    weight dtype at the matmuls, accumulation stays f32.
    """
    B, S, D = x.shape
    H = w1.shape[1]
    M = B * S

    # Fold the LayerNorm affine into fc1 (algebraically exact):
    #   (xhat*gamma + beta) @ W1 + b1 == xhat @ (gamma[:,None]*W1) + (b1 + beta@W1)
    w1f = w1.astype(jnp.float32)
    w1_fold = (gamma.astype(jnp.float32)[:, None] * w1f).astype(w1.dtype)
    b1_fold = b1.astype(jnp.float32) + beta.astype(jnp.float32) @ w1f

    w_bytes = jnp.dtype(w1.dtype).itemsize
    act_bytes = jnp.dtype(x.dtype).itemsize
    # ~100 MiB on v5e/v6e (128 MiB physical), ~51 MiB on v7x (64 MiB physical).
    vmem_budget = min(int(_vmem_capacity_bytes() * 0.8), 100 * 1024 * 1024)

    tm = _pick_tm(M, block_m)
    th = _pick_th(H, tm, D, w_bytes, act_bytes, vmem_budget)
    grid = (pl.cdiv(M, tm), pl.cdiv(H, th))

    x2d = x.reshape(M, D)
    b1_2d = b1_fold.reshape(1, H)                  # f32
    b2_2d = b2.reshape(1, D).astype(jnp.float32)

    kernel = functools.partial(_prenorm_mlp_kernel, eps=eps)

    out2d = pl.pallas_call(
        kernel,
        out_shape=jax.ShapeDtypeStruct((M, D), x.dtype),
        grid=grid,
        in_specs=[
            pl.BlockSpec((tm, D), lambda i, hk: (i, 0)),    # x   (resident over hk)
            pl.BlockSpec((D, th), lambda i, hk: (0, hk)),   # W1 chunk (streamed)
            pl.BlockSpec((1, th), lambda i, hk: (0, hk)),   # b1 chunk
            pl.BlockSpec((th, D), lambda i, hk: (hk, 0)),   # W2 chunk (streamed)
            pl.BlockSpec((1, D), lambda i, hk: (0, 0)),     # b2  (resident)
        ],
        out_specs=pl.BlockSpec((tm, D), lambda i, hk: (i, 0)),  # acc across hk
        scratch_shapes=[
            pltpu.VMEM((tm, D), w1.dtype),        # xhat (weight dtype -> MXU rate)
            pltpu.VMEM((tm, D), jnp.float32),     # fc2 accumulator
        ],
        compiler_params=pltpu.CompilerParams(
            dimension_semantics=("parallel", "arbitrary"),
            vmem_limit_bytes=vmem_budget,
        ),
    )(x2d, w1_fold, b1_2d, w2, b2_2d)
    return out2d.reshape(B, S, D)


def init_params(key, d_model, widening_factor=4, init_scale=1.0,
                dtype=jnp.float32):
    """LayerNorm affine + Conv1D-style MLP init (zero biases)."""
    hidden = widening_factor * d_model
    k1, k2, k3, k4 = jax.random.split(key, 4)
    gamma = (1.0 + 0.05 * jax.random.normal(k3, (d_model,))).astype(dtype)
    beta = (0.05 * jax.random.normal(k4, (d_model,))).astype(dtype)
    std1 = math.sqrt(2.0 / (d_model + hidden)) * init_scale
    std2 = math.sqrt(2.0 / (hidden + d_model)) * init_scale
    # Stored [in, out] (transpose of torch nn.Linear's [out, in]) so the
    # kernel does x @ W directly — numerically equivalent to x @ W_torch.T.
    w1 = (jax.random.normal(k1, (d_model, hidden)) * std1).astype(dtype)
    b1 = jnp.zeros((hidden,), dtype=dtype)
    w2 = (jax.random.normal(k2, (hidden, d_model)) * std2).astype(dtype)
    b2 = jnp.zeros((d_model,), dtype=dtype)
    return gamma, beta, w1, b1, w2, b2


def prenorm_mlp_reference(x, gamma, beta, w1, b1, w2, b2, eps=1e-5):
    xf = x.astype(jnp.float32)
    mean = jnp.mean(xf, axis=-1, keepdims=True)
    xc = xf - mean
    var = jnp.mean(xc * xc, axis=-1, keepdims=True)
    y = (xc * lax.rsqrt(var + eps) * gamma.astype(jnp.float32)
         + beta.astype(jnp.float32))
    h = y @ w1.astype(jnp.float32) + b1.astype(jnp.float32)
    h = 0.5 * h * (1.0 + lax.erf(h / math.sqrt(2.0)))
    out = h @ w2.astype(jnp.float32) + b2.astype(jnp.float32)
    return out.astype(x.dtype)


if __name__ == "__main__":
    key = jax.random.PRNGKey(0)
    kx, kp = jax.random.split(key)

    # Small, lane-friendly demo shapes: D multiple of 128 keeps stores
    # unmasked; M = 256 with block_m=128 gives a 2-tile "parallel" grid.
    # (Real models should use D/H multiples of 256 to fill the v6e/v7x MXU.)
    B, S, D = 2, 128, 128
    widening_factor = 2          # H = 256

    x = jax.random.normal(kx, (B, S, D), dtype=jnp.float32)

    # ---- f32 weights: tight check against the f32 reference ----
    params32 = init_params(kp, D, widening_factor, dtype=jnp.float32)
    out32 = prenorm_mlp_forward(x, *params32, block_m=128)
    jax.block_until_ready(out32)
    ref32 = prenorm_mlp_reference(x, *params32)
    assert out32.shape == (B, S, D)
    err32 = jnp.max(jnp.abs(out32 - ref32))
    assert jnp.allclose(out32, ref32, atol=2e-3, rtol=2e-3), (
        f"f32 mismatch vs reference: max abs err {err32:.3e}")

    # ---- bf16 weights (recommended path: ~2-4x MXU rate, half the weight
    # VMEM); activations are cast to bf16 at the matmuls -> wider tolerance ----
    params16 = tuple(p.astype(jnp.bfloat16) for p in params32)
    out16 = prenorm_mlp_forward(x, *params16, block_m=128)
    jax.block_until_ready(out16)
    ref16 = prenorm_mlp_reference(x, *params16)
    err16 = jnp.max(jnp.abs(out16 - ref16))
    assert jnp.allclose(out16, ref16, atol=3e-2, rtol=3e-2), (
        f"bf16 mismatch vs reference: max abs err {err16:.3e}")

    print("KERNEL_OK")
</pallas_src>

<mosaic_0001>
module attributes {stable_mosaic.version = 11 : i64} {
  func.func @_prenorm_mlp_kernel(%arg0: i32, %arg1: i32, %arg2: memref<128x128xf32, #tpu.memory_space<vmem>>, %arg3: memref<128x256xf32, #tpu.memory_space<vmem>>, %arg4: memref<1x256xf32, #tpu.memory_space<vmem>>, %arg5: memref<256x128xf32, #tpu.memory_space<vmem>>, %arg6: memref<1x128xf32, #tpu.memory_space<vmem>>, %arg7: memref<128x128xf32, #tpu.memory_space<vmem>>, %arg8: memref<128x128xf32, #tpu.memory_space<vmem>>, %arg9: memref<128x128xf32, #tpu.memory_space<vmem>>) attributes {dimension_semantics = [#tpu.dimension_semantics<parallel>, #tpu.dimension_semantics<arbitrary>], iteration_bounds = array<i64: 2, 1>, scalar_prefetch = 0 : i64, scratch_operands = 2 : i64, tpu.core_type = #tpu.core_type<tc>, window_params = [{transform_indices = @transform_0, window_bounds = array<i64: 128, 128>}, {transform_indices = @transform_1, window_bounds = array<i64: 128, 256>}, {transform_indices = @transform_2, window_bounds = array<i64: 1, 256>}, {transform_indices = @transform_3, window_bounds = array<i64: 256, 128>}, {pipeline_mode = #tpu.pipeline_mode<synchronous>, transform_indices = @transform_4, window_bounds = array<i64: 1, 128>}, {transform_indices = @transform_5, window_bounds = array<i64: 128, 128>}]} {
    %c0_i32 = arith.constant 0 : i32
    %0 = arith.cmpi eq, %arg1, %c0_i32 : i32
    %1 = arith.extui %0 : i1 to i32
    %c0_i32_0 = arith.constant 0 : i32
    %2 = arith.cmpi ne, %1, %c0_i32_0 : i32
    scf.if %2 {
      %c0_18 = arith.constant 0 : index
      %c0_19 = arith.constant 0 : index
      %25 = vector.load %arg2[%c0_18, %c0_19] : memref<128x128xf32, #tpu.memory_space<vmem>>, vector<128x128xf32>
      %cst_20 = arith.constant dense<0.000000e+00> : vector<128xf32>
      %26 = vector.multi_reduction <add>, %25, %cst_20 [1] : vector<128x128xf32> to vector<128xf32>
      %27 = vector.shape_cast %26 : vector<128xf32> to vector<128x1xf32>
      %cst_21 = arith.constant 1.280000e+02 : f32
      %28 = vector.broadcast %cst_21 : f32 to vector<128x1xf32>
      %29 = arith.divf %27, %28 : vector<128x1xf32>
      %30 = arith.mulf %25, %25 : vector<128x128xf32>
      %cst_22 = arith.constant dense<0.000000e+00> : vector<128xf32>
      %31 = vector.multi_reduction <add>, %30, %cst_22 [1] : vector<128x128xf32> to vector<128xf32>
      %32 = vector.shape_cast %31 : vector<128xf32> to vector<128x1xf32>
      %cst_23 = arith.constant 1.280000e+02 : f32
      %33 = vector.broadcast %cst_23 : f32 to vector<128x1xf32>
      %34 = arith.divf %32, %33 : vector<128x1xf32>
      %35 = arith.mulf %29, %29 : vector<128x1xf32>
      %36 = arith.subf %34, %35 : vector<128x1xf32>
      %cst_24 = arith.constant 0.000000e+00 : f32
      %37 = vector.broadcast %cst_24 : f32 to vector<128x1xf32>
      %38 = arith.maximumf %36, %37 : vector<128x1xf32>
      %39 = vector.broadcast %29 : vector<128x1xf32> to vector<128x128xf32>
      %40 = arith.subf %25, %39 : vector<128x128xf32>
      %cst_25 = arith.constant 9.99999974E-6 : f32
      %41 = vector.broadcast %cst_25 : f32 to vector<128x1xf32>
      %42 = arith.addf %38, %41 : vector<128x1xf32>
      %43 = math.rsqrt %42 : vector<128x1xf32>
      %44 = vector.broadcast %43 : vector<128x1xf32> to vector<128x128xf32>
      %45 = arith.mulf %40, %44 : vector<128x128xf32>
      %c0_26 = arith.constant 0 : index
      %c0_27 = arith.constant 0 : index
      %46 = vector.load %arg8[%c0_26, %c0_27] : memref<128x128xf32, #tpu.memory_space<vmem>>, vector<128x128xf32>
      tpu.vector_store %arg8[%c0_26, %c0_27], %45 {strides = array<i32>} : memref<128x128xf32, #tpu.memory_space<vmem>>, vector<128x128xf32>,
      %cst_28 = arith.constant 0.000000e+00 : f32
      %47 = vector.broadcast %cst_28 : f32 to vector<128x128xf32>
      %c0_29 = arith.constant 0 : index
      %c0_30 = arith.constant 0 : index
      %48 = vector.load %arg9[%c0_29, %c0_30] : memref<128x128xf32, #tpu.memory_space<vmem>>, vector<128x128xf32>
      tpu.vector_store %arg9[%c0_29, %c0_30], %47 {strides = array<i32>} : memref<128x128xf32, #tpu.memory_space<vmem>>, vector<128x128xf32>,
    } else {
    }
    %c0 = arith.constant 0 : index
    %c0_1 = arith.constant 0 : index
    %3 = vector.load %arg8[%c0, %c0_1] : memref<128x128xf32, #tpu.memory_space<vmem>>, vector<128x128xf32>
    %c0_2 = arith.constant 0 : index
    %c0_3 = arith.constant 0 : index
    %4 = vector.load %arg3[%c0_2, %c0_3] : memref<128x256xf32, #tpu.memory_space<vmem>>, vector<128x256xf32>
    %cst = arith.constant dense<0.000000e+00> : vector<128x256xf32>
    %5 = tpu.matmul %3, %4, %cst {dimension_numbers = #tpu.dot_dimension_numbers<[1], [0], [0], [1], [0, 0, 1, 1], [], []>} : vector<128x128xf32>, vector<128x256xf32>, vector<128x256xf32> -> vector<128x256xf32>
    %c0_4 = arith.constant 0 : index
    %c0_5 = arith.constant 0 : index
    %6 = vector.load %arg4[%c0_4, %c0_5] : memref<1x256xf32, #tpu.memory_space<vmem>>, vector<1x256xf32>
    %7 = vector.broadcast %6 : vector<1x256xf32> to vector<128x256xf32>
    %8 = arith.addf %5, %7 : vector<128x256xf32>
    %cst_6 = arith.constant 5.000000e-01 : f32
    %9 = vector.broadcast %cst_6 : f32 to vector<128x256xf32>
    %10 = arith.mulf %9, %8 : vector<128x256xf32>
    %cst_7 = arith.constant 0.707106769 : f32
    %11 = vector.broadcast %cst_7 : f32 to vector<128x256xf32>
    %12 = arith.mulf %8, %11 : vector<128x256xf32>
    %13 = math.erf %12 : vector<128x256xf32>
    %cst_8 = arith.constant 1.000000e+00 : f32
    %14 = vector.broadcast %cst_8 : f32 to vector<128x256xf32>
    %15 = arith.addf %14, %13 : vector<128x256xf32>
    %16 = arith.mulf %10, %15 : vector<128x256xf32>
    %c0_9 = arith.constant 0 : index
    %c0_10 = arith.constant 0 : index
    %17 = vector.load %arg9[%c0_9, %c0_10] : memref<128x128xf32, #tpu.memory_space<vmem>>, vector<128x128xf32>
    %c0_11 = arith.constant 0 : index
    %c0_12 = arith.constant 0 : index
    %18 = vector.load %arg5[%c0_11, %c0_12] : memref<256x128xf32, #tpu.memory_space<vmem>>, vector<256x128xf32>
    %cst_13 = arith.constant dense<0.000000e+00> : vector<128x128xf32>
    %19 = tpu.matmul %16, %18, %cst_13 {dimension_numbers = #tpu.dot_dimension_numbers<[1], [0], [0], [1], [0, 0, 1, 1], [], []>} : vector<128x256xf32>, vector<256x128xf32>, vector<128x128xf32> -> vector<128x128xf32>
    %20 = arith.addf %17, %19 : vector<128x128xf32>
    %c0_14 = arith.constant 0 : index
    %c0_15 = arith.constant 0 : index
    %21 = vector.load %arg9[%c0_14, %c0_15] : memref<128x128xf32, #tpu.memory_space<vmem>>, vector<128x128xf32>
    tpu.vector_store %arg9[%c0_14, %c0_15], %20 {strides = array<i32>} : memref<128x128xf32, #tpu.memory_space<vmem>>, vector<128x128xf32>,
    %c0_i32_16 = arith.constant 0 : i32
    %22 = arith.cmpi eq, %arg1, %c0_i32_16 : i32
    %23 = arith.extui %22 : i1 to i32
    %c0_i32_17 = arith.constant 0 : i32
    %24 = arith.cmpi ne, %23, %c0_i32_17 : i32
    scf.if %24 {
      %c0_18 = arith.constant 0 : index
      %c0_19 = arith.constant 0 : index
      %25 = vector.load %arg9[%c0_18, %c0_19] : memref<128x128xf32, #tpu.memory_space<vmem>>, vector<128x128xf32>
      %c0_20 = arith.constant 0 : index
      %c0_21 = arith.constant 0 : index
      %26 = vector.load %arg6[%c0_20, %c0_21] : memref<1x128xf32, #tpu.memory_space<vmem>>, vector<1x128xf32>
      %27 = vector.broadcast %26 : vector<1x128xf32> to vector<128x128xf32>
      %28 = arith.addf %25, %27 : vector<128x128xf32>
      %c0_22 = arith.constant 0 : index
      %c0_23 = arith.constant 0 : index
      %29 = vector.load %arg7[%c0_22, %c0_23] : memref<128x128xf32, #tpu.memory_space<vmem>>, vector<128x128xf32>
      tpu.vector_store %arg7[%c0_22, %c0_23], %28 {strides = array<i32>} : memref<128x128xf32, #tpu.memory_space<vmem>>, vector<128x128xf32>,
    } else {
    }
    return
  }
  func.func @transform_0(%arg0: i32, %arg1: i32) -> (i32, i32) {
    %c0_i32 = arith.constant 0 : i32
    %c0_i32_0 = arith.constant 0 : i32
    return %arg0, %c0_i32 : i32, i32
  }
  func.func @transform_1(%arg0: i32, %arg1: i32) -> (i32, i32) {
    %c0_i32 = arith.constant 0 : i32
    %c0_i32_0 = arith.constant 0 : i32
    return %c0_i32, %arg1 : i32, i32
  }
  func.func @transform_2(%arg0: i32, %arg1: i32) -> (i32, i32) {
    %c0_i32 = arith.constant 0 : i32
    %c0_i32_0 = arith.constant 0 : i32
    return %c0_i32, %arg1 : i32, i32
  }
  func.func @transform_3(%arg0: i32, %arg1: i32) -> (i32, i32) {
    %c0_i32 = arith.constant 0 : i32
    %c0_i32_0 = arith.constant 0 : i32
    return %arg1, %c0_i32 : i32, i32
  }
  func.func @transform_4(%arg0: i32, %arg1: i32) -> (i32, i32) {
    %c0_i32 = arith.constant 0 : i32
    %c0_i32_0 = arith.constant 0 : i32
    %c0_i32_1 = arith.constant 0 : i32
    return %c0_i32, %c0_i32_0 : i32, i32
  }
  func.func @transform_5(%arg0: i32, %arg1: i32) -> (i32, i32) {
    %c0_i32 = arith.constant 0 : i32
    %c0_i32_0 = arith.constant 0 : i32
    return %arg0, %c0_i32 : i32, i32
  }
}

</mosaic_0001>

<bundles_post_ra>
// kernel: tpu_custom_call.1
= control target key start
LH: loop header
LB: loop body
LE: loop exit
PB: predicated region body
PF: predicated region fallthrough
CT: control target
= control target key end

     0   :  { %s2450_s0 = inlined_call_operand.hbm [shape: f32[256,128], index: 0, kind: input, shape index: {}]   ;;  %s2451_s1 = inlined_call_operand.hbm [shape: f32[128,256], index: 1, kind: input, shape index: {}]   ;;  %s2452_s2 = inlined_call_operand.vmem [shape: f32[1,256], index: 2, kind: input, shape index: {}]   ;;  %s2453_s3 = inlined_call_operand.hbm [shape: f32[256,128], index: 3, kind: input, shape index: {}]   ;;  %s2454_s4 = inlined_call_operand.vmem [shape: f32[1,128], index: 4, kind: input, shape index: {}]   ;;  %s2455_s5 = inlined_call_operand.hbm [shape: f32[256,128], index: 5, kind: output, shape index: {}]  }
   0x1   :  { %2461 = sst [smem:[#allocation14_spill]] %s2451_s1 }
   0x2   :  { %10 = vsyncpa [#allocation5], 0 }
   0x3   :  { %12 = vsyncpa [#allocation5 + $0x1], 0 }
   0x4   :  { %13 = vsyncpa [#allocation8], 0 }
   0x5   :  { %14 = vsyncpa [#allocation6], 0 }
   0x6   :  { %16 = vsyncpa [#allocation6 + $0x1], 0  ;;  %s1890_s18 = smov 0   ;;  %s1892_s19 = smov 0  }
   0x7   :  { %s1894_s20 = smov 0   ;;  %s1896_s21 = smov 0  }
   0x8   :  { %s1898_s22 = smov 0   ;;  %s1900_s23 = smov 0  }
   0x9 LB: > { %s1394_s24 = sadd.s32 4294967295, %s1847_s23   ;;  %s1395_s25 = sadd.s32 4294967294, %s1847_s23   ;;  %s1847_s23 = sphi %s1900_s23, %s22_s23   ;;  %s1843_s22 = sphi %s1898_s22, %s2481_s22   ;;  %s1839_s21 = sphi %s1896_s21, %s2480_s21   ;;  %s1835_s20 = sphi %s1894_s20, %s2479_s20   ;;  %s1831_s19 = sphi %s1892_s19, %s2478_s19   ;;  %s1827_s18 = sphi %s1890_s18, %s2477_s18  }
   0xa   : > { %p54_p0 = scmp.ne.s32.totalorder %s1831_s19, %s1827_s18  ;;  %p1924_p1 = scmp.eq.s32.totalorder %s1394_s24, 0 }
   0xb   : > { %p1928_p2 = scmp.eq.s32.totalorder %s1394_s24, 1  ;;  %p183_p3 = scmp.eq.s32.totalorder %s1395_s25, 1 }
   0xc   : > { %s2462_s26 = scalar_select %p1924_p1, 1, 0 }
   0xd   : > { %p1934_p4 = por %p1924_p1, %p54_p0  ;;  %p1396_p5 = scmp.ge.s32.totalorder %s1847_s23, 1 }
   0xe   : > { %p1939_p6 = por %p183_p3, %p54_p0  ;;  %p190_p7 = scmp.lt.s32.totalorder %s1847_s23, 3 }
   0xf   : > { %s2464_s28 = scalar_select %p1934_p4, 1, 0 }
  0x10   : > { %s2465_s29 = scalar_select %p1939_p6, 1, 0 }
  0x11   : > { %p1944_p8 = pnand %p1396_p5, %p190_p7  ;;  %s1849_s6 = smov [#allocation7]  }
  0x12   : > { %s205_s7 = sshll.u32 %s1849_s6, 4  ;;  %s1850_s9 = smov [#allocation9]   ;;  %s206_s7 = int_to_ptr.vmem [resolvable:$true] %s205_s7 }
  0x13   : > { %p1509_p9 = pneg %p1944_p8  ;;  %s229_s10 = sshll.u32 %s1850_s9, 4  ;;  %s230_s10 = int_to_ptr.vmem [resolvable:$true] %s229_s10 }
  0x14   : > { %s1694_s11 = scalar_lea.vmem %s206_s7, 4096  ;;  %p1702_p5 = scmp.lt.s32.totalorder %s206_s7, %s206_s7 }
  0x15   : > { %p1953_p11 = pnand %p1509_p9, %p1924_p1  ;;  %p1695_p13 = scmp.ne.s32.totalorder %s206_s7, %s1694_s11 }
  0x16   : > { %p1703_p7 = scmp.lt.s32.totalorder %s1694_s11, %s1694_s11 }
  0x17   : > { %p1685_p12 = pneg %p1953_p11 }
  0x18   : > { %p1704_p10 = por %p1703_p7, %p1702_p5 }
  0x19   : > { %p1697_p0 = pnand %p1695_p13, %p1685_p12 }
  0x1b   : > { %p1698_p3 = pneg %p1697_p0 }
  0x1d   : > { %p1705_p9 = pnand %p1704_p10, %p1698_p3 }
  0x1f   : > { %1708 = shalt.err (!%p1705_p9)
}
  0x20   : > { %s1851_s12 = smov 256   ;;  %s1852_s13 = smov 16  }
  0x21   : > { %s2468_s1 = sld [smem:[#allocation14_spill]]  ;;  %s1720_s16 = scalar_lea.vmem %s230_s10, 4096 }
  0x22   : > { %p1721_p6 = scmp.ne.s32.totalorder %s230_s10, %s1720_s16  ;;  %p1728_p1 = scmp.lt.s32.totalorder %s230_s10, %s230_s10 }
  0x23   : > { %p1729_p4 = scmp.lt.s32.totalorder %s1720_s16, %s1720_s16 }
  0x24   : > { %p1723_p13 = pnand %p1721_p6, %p1685_p12 }
  0x25   : > { %p1730_p5 = por %p1729_p4, %p1728_p1 }
  0x26   : > { %p1724_p0 = pneg %p1723_p13 }
  0x27   : > { %1512 = dma.hbm_to_vmem [thread:$0]  (!%p1953_p11), %s2468_s1, 4096, %s206_s7, [#allocation8], %s1851_s12, %s1851_s12, %s1852_s13  }
  0x28   : > { %p1731_p10 = pnand %p1730_p5, %p1724_p0 }
  0x2a   : > { %1734 = shalt.err (!%p1731_p10)
}
  0x2b   : > { %s2459_s17 = smov 128   ;;  %s2460_s24 = smov 8  }
  0x2c   : > { %1515 = dma.hbm_to_vmem [thread:$0]  (!%p1953_p11), %s2453_s3, 4096, %s230_s10, [#allocation8], %s2459_s17, %s2459_s17, %s2460_s24  }
  0x2d   : > { %s34_s7 = sadd.s32 1, %s1843_s22  ;;  %s41_s9 = sadd.s32 1, %s1835_s20 }
  0x2e   : > { %p36_p1 = scmp.ge.s32.totalorder %s34_s7, 2  ;;  %p48_p4 = scmp.ne.s32.totalorder %s1835_s20, %s1831_s19 }
  0x2f   : > { %p49_p6 = scmp.eq.s32.totalorder %s1847_s23, 0  ;;  %p1526_p12 = scmp.lt.s32.totalorder %s1847_s23, 2 }
  0x30   : > { %s2483_s7 = smov (%p36_p1, %s34_s7), 0  ;;  %p1988_p7 = por %p1928_p2, %p48_p4 }
  0x31   : > { %p50_p3 = por %p49_p6, %p48_p4  ;;  %s38_s11 = ssub.s32 %s1843_s22, %s2483_s7 }
  0x32   : > { %s246_s12 = sand.u32 1, %s1835_s20   ;;  %p39_p9 = scmp.eq.s32.totalorder %s38_s11, 0 }
  0x33   : > { %s1401_s10 = sshll.u32 %s246_s12, 7  ;;  %s1415_s13 = sshll.u32 %s1843_s22, 11 }
  0x34   : > { %s1997_s14 = scalar_select %p39_p9, %s1835_s20, %s41_s9  }
  0x35   : > { %s256_s25 = scalar_lea.hbm %s2450_s0, %s1415_s13  ;;  %s250_s6 = scalar_lea.vmem [#allocation4], %s1401_s10 }
  0x36   : > { %s257_s17 = sshll.u32 %s250_s6, 4  ;;  %p2004_p11 = pnand %p1526_p12, %p50_p3  ;;  %s258_s17 = int_to_ptr.vmem [resolvable:$true] %s257_s17 }
  0x37   : > { %s247_s24 = scalar_lea.sflag [#allocation5], %s246_s12  ;;  %s1748_s11 = scalar_lea.vmem %s258_s17, 2048 }
  0x38   : > { %p1737_p2 = pneg %p2004_p11  ;;  %p1749_p13 = scmp.ne.s32.totalorder %s258_s17, %s1748_s11 }
  0x39   : > { %s1855_s9 = smov [#allocation4]  }
  0x3a   : > { %p1751_p0 = pnand %p1749_p13, %p1737_p2  ;;  %s1753_s1 = sshll.u32 %s1855_s9, 4  ;;  %s1754_s1 = int_to_ptr.vmem [resolvable:$false] %s1753_s1 }
  0x3b   : > { %s1755_s13 = scalar_lea.vmem %s1754_s1, 4096  ;;  %p1756_p10 = scmp.lt.s32.totalorder %s258_s17, %s1754_s1 }
  0x3c   : > { %p1752_p5 = pneg %p1751_p0  ;;  %p1757_p1 = scmp.lt.s32.totalorder %s1755_s13, %s1748_s11 }
  0x3e   : > { %p1758_p4 = por %p1757_p1, %p1756_p10 }
  0x40   : > { %p1759_p6 = pnand %p1758_p4, %p1752_p5 }
  0x42   : > { %1762 = shalt.err (!%p1759_p6)
}
  0x43   : > { %s2471_s10 = smov 8   ;;  %s2472_s15 = smov 128  }
  0x44   : > { %1519 = dma.hbm_to_vmem [thread:$0]  (!%p2004_p11), %s256_s25, 2048, %s258_s17, %s247_s24, %s2472_s15, %s2472_s15, %s2471_s10  }
  0x45   : > { %269 = sbr.rel (%p1944_p8) target bundleno = 736 (0x2e0), region = 40  ;;  %s2018_s12 = sand.u32 (!%p1944_p8), 1, %s1831_s19  }
  0x46   : > { %s1405_s1 = sshll.u32 (!%p1944_p8), %s2018_s12, 7  ;;  %s272_s16 = scalar_lea.sflag (!%p1944_p8), [#allocation5], %s2018_s12 }
  0x47   : > { %s2024_s6 = scalar_lea.vmem (!%p1944_p8), [#allocation4], %s1405_s1  ;;  %p2473_p12 = scmp.ne.s32.totalorder (!%p1944_p8), %s2464_s28, 0 }
  0x4a   : > { %1814 = dma.done.wait (%p2473_p12), %s272_s16, 2048  }
  0x4b   : > { %1816 = vsyncadd (%p2473_p12), %s272_s16, 4294965248  ;;  %p2474_p3 = scmp.ne.s32.totalorder %s2462_s26, 0 }
  0x4d   : > { %1818 = dma.done.wait (%p2474_p3), [#allocation8], 8192  }
  0x4e   : > { %1820 = vsyncadd (%p2474_p3), [#allocation8], 4294959104  ;;  %v2035_v0 = vld [vmem:[%s2024_s6 + $0x8] sm:$0xff]  ;;  %v2038_v1 = vld [vmem:[%s2024_s6] sm:$0xff]  ;;  %v1856_v51 = vmov 0.0   ;;  %s2362_s24 = scalar_lea.vmem [#allocation10], %s1405_s1 }
  0x4f   : > { %345 = vadd.xlane.f32.xlu1 %v2035_v0  ;;  %343 = vadd.xlane.f32.xlu0 %v2038_v1  ;;  %v393_v2 = vmul.f32 %v2035_v0, %v2035_v0  ;;  %v392_v3 = vmul.f32 %v2038_v1, %v2038_v1  ;;  %v2047_v4 = vld [vmem:[%s2024_s6 + $0x10] sm:$0xff]  ;;  %v647_v6 = vld [vmem:[#allocation7 + $0xf8] sm:$0xff]  ;;  %v645_v9 = vld [vmem:[#allocation7 + $0xe8] sm:$0xff]  ;;  %s1416_s25 = sshll.u32 %s1839_s21, 11  ;;  %s1278_s27 = sshll.u32 %s2362_s24, 4  ;;  %s2400_s27 = int_to_ptr.vmem [resolvable:$true] %s1278_s27 }
  0x50   : > { %v394_v5 = vmul.f32 %v2047_v4, %v2047_v4  ;;  %v646_v7 = vld [vmem:[#allocation7 + $0xf0] sm:$0xff]  ;;  %v2052_v8 = vld [vmem:[%s2024_s6 + $0x18] sm:$0xff]  ;;  %660 = vmatprep.subr.mxu0 %v647_v6  ;;  %v644_v10 = vld [vmem:[#allocation7 + $0xe0] sm:$0xff]  ;;  %724 = vmatprep.mubr.f32.mxu0 %v1856_v51  ;;  %s2398_s13 = scalar_lea.hbm %s2455_s5, %s1416_s25  ;;  %s1265_s10 = scalar_lea.sflag [#allocation6], %s2018_s12 }
  0x51   : > { %661 = vmatpush1.msra.mxu0 %v646_v7  ;;  %v395_v11 = vmul.f32 %v2052_v8, %v2052_v8  ;;  %v2058_v12 = vld [vmem:[%s2024_s6 + $0x20] sm:$0xff]  ;;  %v643_v13 = vld [vmem:[#allocation7 + $0xd8] sm:$0xff]  ;;  %v642_v14 = vld [vmem:[#allocation7 + $0xd0] sm:$0xff]  ;;  %s1763_s15 = scalar_lea.vmem %s2400_s27, 2048  ;;  %s1857_s21 = smov [#allocation10]  }
  0x52   : > { %662 = vmatprep.subr.mxu0 %v645_v9  ;;  %v641_v15 = vld [vmem:[#allocation7 + $0xc8] sm:$0xff]  ;;  %v396_v16 = vmul.f32 %v2058_v12, %v2058_v12  ;;  %v640_v17 = vld [vmem:[#allocation7 + $0xc0] sm:$0xff]  ;;  %v639_v19 = vld [vmem:[#allocation7 + $0xb8] sm:$0xff]  ;;  %p1764_p8 = scmp.ne.s32.totalorder %s2400_s27, %s1763_s15  ;;  %s1767_s1 = sshll.u32 %s1857_s21, 4  ;;  %s1768_s1 = int_to_ptr.vmem [resolvable:$false] %s1767_s1 }
  0x53   : > { %410 = vadd.xlane.f32.xlu1 %v393_v2  ;;  %408 = vadd.xlane.f32.xlu0 %v392_v3  ;;  %v2064_v18 = vld [vmem:[%s2024_s6 + $0x28] sm:$0xff]  ;;  %v638_v20 = vld [vmem:[#allocation7 + $0xb0] sm:$0xff]  ;;  %v636_v24 = vld [vmem:[#allocation7 + $0xa0] sm:$0xff]  ;;  %s1769_s16 = scalar_lea.vmem %s1768_s1, 4096  ;;  %p1770_p2 = scmp.lt.s32.totalorder %s2400_s27, %s1768_s1 }
  0x54   : > { %663 = vmatpush1.msra.mxu0 %v644_v10  ;;  %v397_v21 = vmul.f32 %v2064_v18, %v2064_v18  ;;  %v637_v22 = vld [vmem:[#allocation7 + $0xa8] sm:$0xff]  ;;  %v2070_v23 = vld [vmem:[%s2024_s6 + $0x30] sm:$0xff]  ;;  %v635_v25 = vld [vmem:[#allocation7 + $0x98] sm:$0xff]  ;;  %p1765_p9 = pnand %p1764_p8, %p1988_p7  ;;  %p1771_p13 = scmp.lt.s32.totalorder %s1769_s16, %s1763_s15 }
  0x55   : > { %664 = vmatprep.subr.mxu0 %v643_v13  ;;  %v634_v26 = vld [vmem:[#allocation7 + $0x90] sm:$0xff]  ;;  %v398_v27 = vmul.f32 %v2070_v23, %v2070_v23  ;;  %v633_v28 = vld [vmem:[#allocation7 + $0x88] sm:$0xff]  ;;  %v2076_v29 = vld [vmem:[%s2024_s6 + $0x38] sm:$0xff] }
  0x56   : > { %665 = vmatpush1.msra.mxu0 %v642_v14  ;;  %v632_v30 = vld [vmem:[#allocation7 + $0x80] sm:$0xff]  ;;  %v631_v31 = vld [vmem:[#allocation7 + $0x78] sm:$0xff]  ;;  %v399_v32 = vmul.f32 %v2076_v29, %v2076_v29  ;;  %v630_v33 = vld [vmem:[#allocation7 + $0x70] sm:$0xff]  ;;  %p1766_p11 = pneg %p1765_p9  ;;  %p1772_p0 = por %p1771_p13, %p1770_p2 }
  0x57   : > { %347 = vadd.xlane.f32.xlu0 %v2047_v4  ;;  %412 = vadd.xlane.f32.xlu1 %v394_v5  ;;  %v2082_v34 = vld [vmem:[%s2024_s6 + $0x40] sm:$0xff]  ;;  %v629_v35 = vld [vmem:[#allocation7 + $0x68] sm:$0xff]  ;;  %v627_v38 = vld [vmem:[#allocation7 + $0x58] sm:$0xff] }
  0x58   : > { %666 = vmatprep.subr.mxu0 %v641_v15  ;;  %v628_v36 = vld [vmem:[#allocation7 + $0x60] sm:$0xff]  ;;  %v400_v37 = vmul.f32 %v2082_v34, %v2082_v34  ;;  %v2088_v39 = vld [vmem:[%s2024_s6 + $0x48] sm:$0xff]  ;;  %v626_v40 = vld [vmem:[#allocation7 + $0x50] sm:$0xff]  ;;  %p1773_p5 = pnand %p1772_p0, %p1766_p11 }
  0x59   : > { %667 = vmatpush1.msra.mxu0 %v640_v17  ;;  %v625_v41 = vld [vmem:[#allocation7 + $0x48] sm:$0xff]  ;;  %v401_v42 = vmul.f32 %v2088_v39, %v2088_v39  ;;  %v624_v43 = vld [vmem:[#allocation7 + $0x40] sm:$0xff]  ;;  %v2094_v44 = vld [vmem:[%s2024_s6 + $0x50] sm:$0xff] }
  0x5a   : > { %668 = vmatprep.subr.mxu0 %v639_v19  ;;  %v623_v45 = vld [vmem:[#allocation7 + $0x38] sm:$0xff]  ;;  %v622_v46 = vld [vmem:[#allocation7 + $0x30] sm:$0xff]  ;;  %v402_v47 = vmul.f32 %v2094_v44, %v2094_v44  ;;  %v621_v48 = vld [vmem:[#allocation7 + $0x28] sm:$0xff] }
  0x5b   : > { %349 = vadd.xlane.f32.xlu0 %v2052_v8  ;;  %414 = vadd.xlane.f32.xlu1 %v395_v11  ;;  %v2100_v49 = vld [vmem:[%s2024_s6 + $0x58] sm:$0xff]  ;;  %v620_v50 = vld [vmem:[#allocation7 + $0x20] sm:$0xff]  ;;  %v618_v54 = vld [vmem:[#allocation7 + $0x10] sm:$0xff] }
  0x5c   : > { %669 = vmatpush1.msra.mxu0 %v638_v20  ;;  %v619_v52 = vld [vmem:[#allocation7 + $0x18] sm:$0xff]  ;;  %v403_v53 = vmul.f32 %v2100_v49, %v2100_v49  ;;  %v2107_v55 = vld [vmem:[%s2024_s6 + $0x60] sm:$0xff]  ;;  %v617_v56 = vld [vmem:[#allocation7 + $0x8] sm:$0xff] }
  0x5d   : > { %670 = vmatprep.subr.mxu0 %v637_v22  ;;  %v616_v57 = vld [vmem:[#allocation7] sm:$0xff]  ;;  %v404_v58 = vmul.f32 %v2107_v55, %v2107_v55  ;;  %v2113_v59 = vld [vmem:[%s2024_s6 + $0x68] sm:$0xff]  ;;  %v2119_v61 = vld [vmem:[%s2024_s6 + $0x70] sm:$0xff] }
  0x5e   : > { %671 = vmatpush1.msra.mxu0 %v636_v24  ;;  %v405_v60 = vmul.f32 %v2113_v59, %v2113_v59  ;;  %v406_v62 = vmul.f32 %v2119_v61, %v2119_v61  ;;  %v2125_v63 = vld [vmem:[%s2024_s6 + $0x78] sm:$0xff]  ;;  %v1027_v6 = vld [vmem:[#allocation9 + $0xf0] sm:$0xff]  ;;  %v1026_v9 = vld [vmem:[#allocation9 + $0xe8] sm:$0xff] }
  0x5f   : > { %351 = vadd.xlane.f32.xlu0 %v2058_v12  ;;  %416 = vadd.xlane.f32.xlu1 %v396_v16  ;;  %v407_v2 = vmul.f32 %v2125_v63, %v2125_v63  ;;  %v1028_v3 = vld [vmem:[#allocation9 + $0xf8] sm:$0xff]  ;;  %v1011_v7 = vld [vmem:[#allocation9 + $0x70] sm:$0xff]  ;;  %v1010_v10 = vld [vmem:[#allocation9 + $0x68] sm:$0xff] }
  0x60   : > { %672 = vmatprep.subr.mxu0 %v635_v25  ;;  %v1012_v5 = vld [vmem:[#allocation9 + $0x78] sm:$0xff]  ;;  %1417 = vmatprep.subr.mxu1 %v1028_v3 }
  0x61   : > { %673 = vmatpush1.msra.mxu0 %v634_v26  ;;  %1418 = vmatpush3.msra.mxu1 %v1012_v5 }
  0x62   : > { %674 = vmatprep.subr.mxu0 %v633_v28  ;;  %1419 = vmatprep.subr.mxu1 %v1027_v6 }
  0x63   : > { %353 = vadd.xlane.f32.xlu0 %v2064_v18  ;;  %418 = vadd.xlane.f32.xlu1 %v397_v21 }
  0x64   : > { %675 = vmatpush1.msra.mxu0 %v632_v30  ;;  %1420 = vmatpush3.msra.mxu1 %v1011_v7 }
  0x65   : > { %676 = vmatprep.subr.mxu0 %v631_v31  ;;  %1421 = vmatprep.subr.mxu1 %v1026_v9 }
  0x66   : > { %677 = vmatpush1.msra.mxu0 %v630_v33  ;;  %1422 = vmatpush3.msra.mxu1 %v1010_v10 }
  0x67   : > { %355 = vadd.xlane.f32.xlu0 %v2070_v23  ;;  %420 = vadd.xlane.f32.xlu1 %v398_v27 }
  0x68   : > { %678 = vmatprep.subr.mxu0 %v629_v35 }
  0x69   : > { %679 = vmatpush1.msra.mxu0 %v628_v36 }
  0x6a   : > { %680 = vmatprep.subr.mxu0 %v627_v38 }
  0x6b   : > { %357 = vadd.xlane.f32.xlu0 %v2076_v29  ;;  %422 = vadd.xlane.f32.xlu1 %v399_v32 }
  0x6c   : > { %681 = vmatpush1.msra.mxu0 %v626_v40 }
  0x6d   : > { %682 = vmatprep.subr.mxu0 %v625_v41 }
  0x6e   : > { %683 = vmatpush1.msra.mxu0 %v624_v43 }
  0x6f   : > { %359 = vadd.xlane.f32.xlu0 %v2082_v34  ;;  %424 = vadd.xlane.f32.xlu1 %v400_v37 }
  0x70   : > { %684 = vmatprep.subr.mxu0 %v623_v45 }
  0x71   : > { %685 = vmatpush1.msra.mxu0 %v622_v46 }
  0x72   : > { %686 = vmatprep.subr.mxu0 %v621_v48 }
  0x73   : > { %361 = vadd.xlane.f32.xlu0 %v2088_v39  ;;  %426 = vadd.xlane.f32.xlu1 %v401_v42 }
  0x74   : > { %687 = vmatpush1.msra.mxu0 %v620_v50 }
  0x75   : > { %688 = vmatprep.subr.mxu0 %v619_v52 }
  0x76   : > { %689 = vmatpush1.msra.mxu0 %v618_v54 }
  0x77   : > { %363 = vadd.xlane.f32.xlu0 %v2094_v44  ;;  %428 = vadd.xlane.f32.xlu1 %v402_v47 }
  0x78   : > { %690 = vmatprep.subr.mxu0 %v617_v56 }
  0x79   : > { %691 = vmatpush1.msra.mxu0 %v616_v57 }
  0x7b   : > { %365 = vadd.xlane.f32.xlu0 %v2100_v49  ;;  %430 = vadd.xlane.f32.xlu1 %v403_v53 }
  0x7f   : > { %367 = vadd.xlane.f32.xlu0 %v2107_v55  ;;  %432 = vadd.xlane.f32.xlu1 %v404_v58 }
  0x83   : > { %369 = vadd.xlane.f32.xlu0 %v2113_v59  ;;  %434 = vadd.xlane.f32.xlu1 %v405_v60 }
  0x87   : > { %371 = vadd.xlane.f32.xlu0 %v2119_v61  ;;  %436 = vadd.xlane.f32.xlu1 %v406_v62 }
  0x8b   : > { %373 = vadd.xlane.f32.xlu0 %v2125_v63  ;;  %438 = vadd.xlane.f32.xlu1 %v407_v2 }
  0xd8   : > { %v346_v11 = vpop.xlane.xlu1 %345  ;;  %v344_v13 = vpop.xlane.xlu0 %343 }
  0xd9   : > { %v2131_v14 = vmul.f32 0.0078125, %v346_v11  ;;  %v376_v15 = vmul.f32 0.0078125, %v344_v13 }
  0xdb   : > { %v457_v16 = vmul.f32 %v2131_v14, %v2131_v14  ;;  %v456_v20 = vmul.f32 %v376_v15, %v376_v15 }
  0xdc   : > { %v411_v17 = vpop.xlane.xlu1 %410  ;;  %v409_v19 = vpop.xlane.xlu0 %408 }
  0xdd   : > { %v441_v21 = vmul.f32 0.0078125, %v411_v17  ;;  %v440_v22 = vmul.f32 0.0078125, %v409_v19  ;;  %v504_v17 = vsub.f32 %v2038_v1, %v376_v15 }
  0xdf   : > { %v473_v24 = vsub.f32 %v441_v21, %v457_v16  ;;  %v472_v25 = vsub.f32 %v440_v22, %v456_v20 }
  0xe0   : > { %v348_v26 = vpop.xlane.xlu0 %347  ;;  %v413_v27 = vpop.xlane.xlu1 %412 }
  0xe1   : > { %v489_v28 = vmax.f32 %v473_v24, 0.0  ;;  %v488_v30 = vmax.f32 %v472_v25, 0.0  ;;  %v2135_v31 = vmul.f32 0.0078125, %v348_v26  ;;  %v442_v32 = vmul.f32 0.0078125, %v413_v27 }
  0xe3   : > { %v520_v33 = vadd.f32 1e-05, %v488_v30  ;;  %v458_v35 = vmul.f32 %v2135_v31, %v2135_v31  ;;  %v521_v36 = vadd.f32 1e-05, %v489_v28 }
  0xe4   : > { %v350_v37 = vpop.xlane.xlu0 %349  ;;  %v415_v38 = vpop.xlane.xlu1 %414 }
  0xe5   : > { %v474_v40 = vsub.f32 %v442_v32, %v458_v35  ;;  %v2139_v41 = vmul.f32 0.0078125, %v350_v37  ;;  %v443_v42 = vmul.f32 0.0078125, %v415_v38  ;;  %1587 = vrsqrt.f32 %v520_v33 }
  0xe6   : > { %1589 = vrsqrt.f32 %v521_v36  ;;  %v505_v33 = vsub.f32 %v2035_v0, %v2131_v14  ;;  %v506_v0 = vsub.f32 %v2047_v4, %v2135_v31 }
  0xe7   : > { %v490_v43 = vmax.f32 %v474_v40, 0.0  ;;  %v459_v45 = vmul.f32 %v2139_v41, %v2139_v41  ;;  %v507_v4 = vsub.f32 %v2052_v8, %v2139_v41 }
  0xe8   : > { %v352_v46 = vpop.xlane.xlu0 %351  ;;  %v417_v47 = vpop.xlane.xlu1 %416 }
  0xe9   : > { %v522_v48 = vadd.f32 1e-05, %v490_v43  ;;  %v475_v50 = vsub.f32 %v443_v42, %v459_v45  ;;  %v2143_v52 = vmul.f32 0.0078125, %v352_v46  ;;  %v444_v53 = vmul.f32 0.0078125, %v417_v47 }
  0xeb   : > { %v491_v54 = vmax.f32 %v475_v50, 0.0  ;;  %v460_v56 = vmul.f32 %v2143_v52, %v2143_v52  ;;  %1591 = vrsqrt.f32 %v522_v48  ;;  %v508_v8 = vsub.f32 %v2058_v12, %v2143_v52 }
  0xec   : > { %v354_v57 = vpop.xlane.xlu0 %353  ;;  %v419_v58 = vpop.xlane.xlu1 %418 }
  0xed   : > { %v523_v60 = vadd.f32 1e-05, %v491_v54  ;;  %v476_v62 = vsub.f32 %v444_v53, %v460_v56  ;;  %v2147_v2 = vmul.f32 0.0078125, %v354_v57  ;;  %v445_v3 = vmul.f32 0.0078125, %v419_v58 }
  0xef   : > { %v492_v5 = vmax.f32 %v476_v62, 0.0  ;;  %v461_v6 = vmul.f32 %v2147_v2, %v2147_v2  ;;  %1593 = vrsqrt.f32 %v523_v60  ;;  %v509_v12 = vsub.f32 %v2064_v18, %v2147_v2 }
  0xf0   : > { %v356_v7 = vpop.xlane.xlu0 %355  ;;  %v421_v9 = vpop.xlane.xlu1 %420 }
  0xf1   : > { %v524_v10 = vadd.f32 1e-05, %v492_v5  ;;  %v477_v11 = vsub.f32 %v445_v3, %v461_v6  ;;  %v2151_v13 = vmul.f32 0.0078125, %v356_v7  ;;  %v446_v16 = vmul.f32 0.0078125, %v421_v9 }
  0xf2   : > { %v1588_v19 = vpop.eup %1587 }
  0xf3   : > { %v493_v20 = vmax.f32 %v477_v11, 0.0  ;;  %v462_v21 = vmul.f32 %v2151_v13, %v2151_v13  ;;  %1595 = vrsqrt.f32 %v524_v10  ;;  %v552_v24 = vmul.f32 %v1588_v19, %v504_v17  ;;  %v1590_v26 = vpop.eup %1589 }
  0xf4   : > { %v358_v22 = vpop.xlane.xlu0 %357  ;;  %v423_v25 = vpop.xlane.xlu1 %422  ;;  %v553_v36 = vmul.f32 %v1590_v26, %v505_v33  ;;  %v510_v18 = vsub.f32 %v2070_v23, %v2151_v13 }
  0xf5   : > { %v525_v27 = vadd.f32 1e-05, %v493_v20  ;;  %v478_v28 = vsub.f32 %v446_v16, %v462_v21  ;;  %v2156_v30 = vmul.f32 0.0078125, %v358_v22  ;;  %v447_v32 = vmul.f32 0.0078125, %v423_v25  ;;  %725 = vmatmul.mubr.f32.vlgmr.msra.gmra.mxu0 %v552_v24 }
  0xf6   : > { %730 = vmatprep.mubr.f32.mxu0 %v1856_v51 }
  0xf7   : > { %v494_v1 = vmax.f32 %v478_v28, 0.0  ;;  %v463_v15 = vmul.f32 %v2156_v30, %v2156_v30  ;;  %1597 = vrsqrt.f32 %v525_v27  ;;  %v511_v23 = vsub.f32 %v2076_v29, %v2156_v30 }
  0xf8   : > { %v360_v35 = vpop.xlane.xlu0 %359  ;;  %v425_v37 = vpop.xlane.xlu1 %424 }
  0xf9   : > { %v1592_v38 = vpop.eup %1591  ;;  %v526_v40 = vadd.f32 1e-05, %v494_v1  ;;  %v479_v42 = vsub.f32 %v447_v32, %v463_v15  ;;  %v2163_v43 = vmul.f32 0.0078125, %v360_v35  ;;  %v448_v45 = vmul.f32 0.0078125, %v425_v37  ;;  %731 = vmatmul.mubr.f32.gmra.mxu0 %v553_v36 }
  0xfa   : > { %736 = vmatprep.mubr.f32.mxu0 %v1856_v51  ;;  %v554_v48 = vmul.f32 %v1592_v38, %v506_v0 }
  0xfb   : > { %v495_v14 = vmax.f32 %v479_v42, 0.0  ;;  %v464_v46 = vmul.f32 %v2163_v43, %v2163_v43  ;;  %1599 = vrsqrt.f32 %v526_v40 }
  0xfc   : > { %v362_v47 = vpop.xlane.xlu0 %361  ;;  %v427_v50 = vpop.xlane.xlu1 %426 }
  0xfd   : > { %v1594_v53 = vpop.eup %1593  ;;  %v527_v54 = vadd.f32 1e-05, %v495_v14  ;;  %v480_v56 = vsub.f32 %v448_v45, %v464_v46  ;;  %v2170_v57 = vmul.f32 0.0078125, %v362_v47  ;;  %v449_v58 = vmul.f32 0.0078125, %v427_v50  ;;  %737 = vmatmul.mubr.f32.gmra.mxu0 %v554_v48 }
  0xfe   : > { %742 = vmatprep.mubr.f32.mxu0 %v1856_v51  ;;  %v555_v3 = vmul.f32 %v1594_v53, %v507_v4 }
  0xff   : > { %v496_v31 = vmax.f32 %v480_v56, 0.0  ;;  %v465_v60 = vmul.f32 %v2170_v57, %v2170_v57  ;;  %1601 = vrsqrt.f32 %v527_v54 }
 0x100   : > { %v364_v62 = vpop.xlane.xlu0 %363  ;;  %v429_v5 = vpop.xlane.xlu1 %428 }
 0x101   : > { %v1596_v6 = vpop.eup %1595  ;;  %v528_v7 = vadd.f32 1e-05, %v496_v31  ;;  %v481_v9 = vsub.f32 %v449_v58, %v465_v60  ;;  %v2177_v10 = vmul.f32 0.0078125, %v364_v62  ;;  %v450_v11 = vmul.f32 0.0078125, %v429_v5  ;;  %743 = vmatmul.mubr.f32.gmra.mxu0 %v555_v3 }
 0x102   : > { %748 = vmatprep.mubr.f32.mxu0 %v1856_v51  ;;  %v556_v19 = vmul.f32 %v1596_v6, %v508_v8  ;;  %v512_v3 = vsub.f32 %v2082_v34, %v2163_v43 }
 0x103   : > { %v497_v41 = vmax.f32 %v481_v9, 0.0  ;;  %v466_v16 = vmul.f32 %v2177_v10, %v2177_v10  ;;  %1603 = vrsqrt.f32 %v528_v7 }
 0x104   : > { %v366_v17 = vpop.xlane.xlu0 %365  ;;  %v431_v20 = vpop.xlane.xlu1 %430 }
 0x105   : > { %v1598_v21 = vpop.eup %1597  ;;  %v529_v22 = vadd.f32 1e-05, %v497_v41  ;;  %v482_v24 = vsub.f32 %v450_v11, %v466_v16  ;;  %v2184_v25 = vmul.f32 0.0078125, %v366_v17  ;;  %v451_v26 = vmul.f32 0.0078125, %v431_v20  ;;  %749 = vmatmul.mubr.f32.gmra.mxu0 %v556_v19 }
 0x106   : > { %754 = vmatprep.mubr.f32.mxu0 %v1856_v51  ;;  %v557_v32 = vmul.f32 %v1598_v21, %v509_v12  ;;  %v513_v17 = vsub.f32 %v2088_v39, %v2170_v57 }
 0x107   : > { %v498_v52 = vmax.f32 %v482_v24, 0.0  ;;  %v467_v27 = vmul.f32 %v2184_v25, %v2184_v25  ;;  %1605 = vrsqrt.f32 %v529_v22  ;;  %v514_v24 = vsub.f32 %v2094_v44, %v2177_v10 }
 0x108   : > { %v368_v28 = vpop.xlane.xlu0 %367  ;;  %v433_v33 = vpop.xlane.xlu1 %432 }
 0x109   : > { %v1600_v1 = vpop.eup %1599  ;;  %v530_v15 = vadd.f32 1e-05, %v498_v52  ;;  %v483_v35 = vsub.f32 %v451_v26, %v467_v27  ;;  %v2191_v36 = vmul.f32 0.0078125, %v368_v28  ;;  %v452_v37 = vmul.f32 0.0078125, %v433_v33  ;;  %755 = vmatmul.mubr.f32.gmra.mxu0 %v557_v32 }
 0x10a   : > { %760 = vmatprep.mubr.f32.mxu0 %v1856_v51  ;;  %v558_v42 = vmul.f32 %v1600_v1, %v510_v18  ;;  %v515_v52 = vsub.f32 %v2100_v49, %v2184_v25  ;;  %v1024_v18 = vld [vmem:[#allocation9 + $0xd8] sm:$0xff] }
 0x10b   : > { %v499_v2 = vmax.f32 %v483_v35, 0.0  ;;  %v468_v38 = vmul.f32 %v2191_v36, %v2191_v36  ;;  %1607 = vrsqrt.f32 %v530_v15  ;;  %v516_v44 = vsub.f32 %v2107_v55, %v2191_v36 }
 0x10c   : > { %v370_v40 = vpop.xlane.xlu0 %369  ;;  %v435_v45 = vpop.xlane.xlu1 %434 }
 0x10d   : > { %v1602_v0 = vpop.eup %1601  ;;  %v531_v14 = vadd.f32 1e-05, %v499_v2  ;;  %v484_v46 = vsub.f32 %v452_v37, %v468_v38  ;;  %v2198_v47 = vmul.f32 0.0078125, %v370_v40  ;;  %v453_v48 = vmul.f32 0.0078125, %v435_v45  ;;  %761 = vmatmul.mubr.f32.gmra.mxu0 %v558_v42  ;;  %v1009_v37 = vld [vmem:[#allocation9 + $0x60] sm:$0xff]  ;;  %v1008_v2 = vld [vmem:[#allocation9 + $0x58] sm:$0xff] }
 0x10e   : > { %766 = vmatprep.mubr.f32.mxu0 %v1856_v51  ;;  %v559_v54 = vmul.f32 %v1602_v0, %v511_v23  ;;  %v1007_v38 = vld [vmem:[#allocation9 + $0x50] sm:$0xff]  ;;  %v1022_v40 = vld [vmem:[#allocation9 + $0xc8] sm:$0xff]  ;;  %v1021_v42 = vld [vmem:[#allocation9 + $0xc0] sm:$0xff] }
 0x10f   : > { %v500_v13 = vmax.f32 %v484_v46, 0.0  ;;  %v469_v50 = vmul.f32 %v2198_v47, %v2198_v47  ;;  %1609 = vrsqrt.f32 %v531_v14  ;;  %v517_v33 = vsub.f32 %v2113_v59, %v2198_v47  ;;  %v1025_v59 = vld [vmem:[#allocation9 + $0xe0] sm:$0xff]  ;;  %v1020_v45 = vld [vmem:[#allocation9 + $0xb8] sm:$0xff]  ;;  %v1019_v14 = vld [vmem:[#allocation9 + $0xb0] sm:$0xff] }
 0x110   : > { %v372_v53 = vpop.xlane.xlu0 %371  ;;  %v437_v56 = vpop.xlane.xlu1 %436  ;;  %1423 = vmatprep.subr.mxu1 %v1025_v59  ;;  %v1004_v0 = vld [vmem:[#allocation9 + $0x38] sm:$0xff]  ;;  %v1003_v46 = vld [vmem:[#allocation9 + $0x30] sm:$0xff]  ;;  %v1018_v47 = vld [vmem:[#allocation9 + $0xa8] sm:$0xff] }
 0x111   : > { %v1604_v58 = vpop.eup %1603  ;;  %v532_v4 = vadd.f32 1e-05, %v500_v13  ;;  %v485_v31 = vsub.f32 %v453_v48, %v469_v50  ;;  %v390_v60 = vmul.f32 0.0078125, %v372_v53  ;;  %v454_v62 = vmul.f32 0.0078125, %v437_v56  ;;  %767 = vmatmul.mubr.f32.gmra.mxu0 %v559_v54  ;;  %1424 = vmatpush3.msra.mxu1 %v1009_v37  ;;  %v1002_v48 = vld [vmem:[#allocation9 + $0x28] sm:$0xff]  ;;  %v1017_v23 = vld [vmem:[#allocation9 + $0xa0] sm:$0xff] }
 0x112   : > { %772 = vmatprep.mubr.f32.mxu0 %v1856_v51  ;;  %v560_v6 = vmul.f32 %v1604_v58, %v512_v3  ;;  %1425 = vmatprep.subr.mxu1 %v1024_v18  ;;  %v1001_v13 = vld [vmem:[#allocation9 + $0x20] sm:$0xff]  ;;  %v1016_v50 = vld [vmem:[#allocation9 + $0x98] sm:$0xff]  ;;  %v1015_v54 = vld [vmem:[#allocation9 + $0x90] sm:$0xff] }
 0x113   : > { %v501_v29 = vmax.f32 %v485_v31, 0.0  ;;  %v470_v30 = vmul.f32 %v390_v60, %v390_v60  ;;  %1611 = vrsqrt.f32 %v532_v4  ;;  %v518_v1 = vsub.f32 %v2119_v61, %v390_v60  ;;  %1426 = vmatpush3.msra.mxu1 %v1008_v2  ;;  %v1023_v61 = vld [vmem:[#allocation9 + $0xd0] sm:$0xff]  ;;  %v1000_v53 = vld [vmem:[#allocation9 + $0x18] sm:$0xff]  ;;  %v1014_v58 = vld [vmem:[#allocation9 + $0x88] sm:$0xff] }
 0x114   : > { %v374_v5 = vpop.xlane.xlu0 %373  ;;  %v439_v7 = vpop.xlane.xlu1 %438  ;;  %1427 = vmatprep.subr.mxu1 %v1023_v61  ;;  %v999_v56 = vld [vmem:[#allocation9 + $0x10] sm:$0xff]  ;;  %v998_v4 = vld [vmem:[#allocation9 + $0x8] sm:$0xff]  ;;  %v1013_v31 = vld [vmem:[#allocation9 + $0x80] sm:$0xff] }
 0x115   : > { %v1606_v9 = vpop.eup %1605  ;;  %v533_v11 = vadd.f32 1e-05, %v501_v29  ;;  %v486_v8 = vsub.f32 %v454_v62, %v470_v30  ;;  %v391_v41 = vmul.f32 0.0078125, %v374_v5  ;;  %v455_v16 = vmul.f32 0.0078125, %v439_v7  ;;  %773 = vmatmul.mubr.f32.gmra.mxu0 %v560_v6  ;;  %1428 = vmatpush3.msra.mxu1 %v1007_v38  ;;  %v997_v60 = vld [vmem:[#allocation9] sm:$0xff] }
 0x116   : > { %778 = vmatprep.mubr.f32.mxu0 %v1856_v51  ;;  %v561_v43 = vmul.f32 %v1606_v9, %v513_v17  ;;  %1429 = vmatprep.subr.mxu1 %v1022_v40  ;;  %v650_v62 = vlaneseq  ;;  %v648_v30 = vld [vmem:[%s2452_s2] sm:$0x3] }
 0x117   : > { %v502_v19 = vmax.f32 %v486_v8, 0.0  ;;  %v471_v34 = vmul.f32 %v391_v41, %v391_v41  ;;  %1613 = vrsqrt.f32 %v533_v11  ;;  %v519_v35 = vsub.f32 %v2125_v63, %v391_v41  ;;  %v1006_v63 = vld [vmem:[#allocation9 + $0x48] sm:$0xff] }
 0x118   : > { %v1608_v20 = vpop.eup %1607  ;;  %1430 = vmatpush3.msra.mxu1 %v1006_v63  ;;  %v651_v3 = vshrl.u32 %v650_v62, 7 }
 0x119   : > { %v534_v21 = vadd.f32 1e-05, %v502_v19  ;;  %v487_v22 = vsub.f32 %v455_v16, %v471_v34  ;;  %779 = vmatmul.mubr.f32.gmra.mxu0 %v561_v43  ;;  %v562_v12 = vmul.f32 %v1608_v20, %v514_v24  ;;  %1431 = vmatprep.subr.mxu1 %v1021_v42 }
 0x11a   : > { %784 = vmatprep.mubr.f32.mxu0 %v1856_v51  ;;  %v652_v29 = vsub.s32 0, %v651_v3  ;;  %v656_v5 = vsub.s32 1, %v651_v3 }
 0x11b   : > { %v503_v26 = vmax.f32 %v487_v22, 0.0  ;;  %1615 = vrsqrt.f32 %v534_v21 }
 0x11c   : > { %v1610_v39 = vpop.eup %1609  ;;  %v2230_v6 = vrot.slane %v648_v30, %v652_v29  ;;  %v2232_v7 = vrot.slane %v648_v30, %v656_v5 }
 0x11d   : > { %v535_v57 = vadd.f32 1e-05, %v503_v26  ;;  %785 = vmatmul.mubr.f32.gmra.mxu0 %v562_v12  ;;  %v563_v27 = vmul.f32 %v1610_v39, %v515_v52 }
 0x11e   : > { %790 = vmatprep.mubr.f32.mxu0 %v1856_v51 }
 0x11f   : > { %1617 = vrsqrt.f32 %v535_v57 }
 0x120   : > { %v1612_v28 = vpop.eup %1611 }
 0x121   : > { %791 = vmatmul.mubr.f32.gmra.mxu0 %v563_v27  ;;  %v564_v10 = vmul.f32 %v1612_v28, %v516_v44 }
 0x122   : > { %796 = vmatprep.mubr.f32.mxu0 %v1856_v51 }
 0x124   : > { %v1614_v32 = vpop.eup %1613 }
 0x125   : > { %797 = vmatmul.mubr.f32.gmra.mxu0 %v564_v10  ;;  %v565_v49 = vmul.f32 %v1614_v32, %v517_v33 }
 0x126   : > { %802 = vmatprep.mubr.f32.mxu0 %v1856_v51 }
 0x128   : > { %v1616_v25 = vpop.eup %1615 }
 0x129   : > { %803 = vmatmul.mubr.f32.gmra.mxu0 %v565_v49  ;;  %v566_v15 = vmul.f32 %v1616_v25, %v518_v1 }
 0x12a   : > { %808 = vmatprep.mubr.f32.mxu0 %v1856_v51 }
 0x12c   : > { %v1618_v55 = vpop.eup %1617 }
 0x12d   : > { %809 = vmatmul.mubr.f32.gmra.mxu0 %v566_v15  ;;  %v567_v36 = vmul.f32 %v1618_v55, %v519_v35 }
 0x12e   : > { %814 = vmatprep.mubr.f32.mxu0 %v1856_v51  ;;  %v1005_v51 = vld [vmem:[#allocation9 + $0x40] sm:$0xff] }
 0x12f   : > { %1432 = vmatpush3.msra.mxu1 %v1005_v51 }
 0x130   : > { %1433 = vmatprep.subr.mxu1 %v1020_v45 }
 0x131   : > { %815 = vmatmul.mubr.f32.gmra.mxu0 %v567_v36  ;;  %1434 = vmatpush3.msra.mxu1 %v1004_v0 }
 0x132   : > { %1435 = vmatprep.subr.mxu1 %v1019_v14 }
 0x133   : > { %1436 = vmatpush3.msra.mxu1 %v1003_v46 }
 0x134   : > { %1437 = vmatprep.subr.mxu1 %v1018_v47 }
 0x135   : > { %1438 = vmatpush3.msra.mxu1 %v1002_v48 }
 0x136   : > { %1439 = vmatprep.subr.mxu1 %v1017_v23 }
 0x137   : > { %1440 = vmatpush3.msra.mxu1 %v1001_v13 }
 0x138   : > { %1441 = vmatprep.subr.mxu1 %v1016_v50 }
 0x139   : > { %1442 = vmatpush3.msra.mxu1 %v1000_v53 }
 0x13a   : > { %1443 = vmatprep.subr.mxu1 %v1015_v54 }
 0x13b   : > { %1444 = vmatpush3.msra.mxu1 %v999_v56 }
 0x13c   : > { %1445 = vmatprep.subr.mxu1 %v1014_v58 }
 0x13d   : > { %1446 = vmatpush3.msra.mxu1 %v998_v4 }
 0x13e   : > { %1447 = vmatprep.subr.mxu1 %v1013_v31 }
 0x13f   : > { %1448 = vmatpush3.msra.mxu1 %v997_v60 }
 0x1b5   : > { %v726_v9 = vpop.f32.mrf.mxu0 }
 0x1b6   : > { %v727_v11 = vadd.f32 %v726_v9, %v2230_v6 }
 0x1b7   : > { %v728_v8 = vpop.f32.mrf.mxu0 }
 0x1b8   : > { %v853_v41 = vmul.f32 0.70710677, %v727_v11  ;;  %v729_v16 = vadd.f32 %v728_v8, %v2232_v7  ;;  %v821_v38 = vmul.f32 0.5, %v727_v11 }
 0x1b9   : > { %v732_v17 = vpop.f32.mrf.mxu0 }
 0x1ba   : > { %1619 = verf.f32 %v853_v41  ;;  %v854_v19 = vmul.f32 0.70710677, %v729_v16  ;;  %v733_v34 = vadd.f32 %v732_v17, %v2230_v6  ;;  %v822_v63 = vmul.f32 0.5, %v729_v16 }
 0x1bb   : > { %v734_v43 = vpop.f32.mrf.mxu0 }
 0x1bc   : > { %1621 = verf.f32 %v854_v19  ;;  %v855_v20 = vmul.f32 0.70710677, %v733_v34  ;;  %v735_v21 = vadd.f32 %v734_v43, %v2232_v7  ;;  %v823_v58 = vmul.f32 0.5, %v733_v34 }
 0x1bd   : > { %v738_v22 = vpop.f32.mrf.mxu0 }
 0x1be   : > { %1623 = verf.f32 %v855_v20  ;;  %v856_v24 = vmul.f32 0.70710677, %v735_v21  ;;  %v739_v26 = vadd.f32 %v738_v22, %v2230_v6  ;;  %v824_v53 = vmul.f32 0.5, %v735_v21 }
 0x1bf   : > { %v740_v12 = vpop.f32.mrf.mxu0 }
 0x1c0   : > { %1625 = verf.f32 %v856_v24  ;;  %v857_v39 = vmul.f32 0.70710677, %v739_v26  ;;  %v741_v57 = vadd.f32 %v740_v12, %v2232_v7  ;;  %v825_v8 = vmul.f32 0.5, %v739_v26 }
 0x1c1   : > { %v744_v52 = vpop.f32.mrf.mxu0 }
 0x1c2   : > { %1627 = verf.f32 %v857_v39  ;;  %v858_v27 = vmul.f32 0.70710677, %v741_v57  ;;  %v2241_v28 = vadd.f32 %v744_v52, %v2230_v6  ;;  %v826_v41 = vmul.f32 0.5, %v741_v57 }
 0x1c3   : > { %v746_v44 = vpop.f32.mrf.mxu0 }
 0x1c4   : > { %1629 = verf.f32 %v858_v27  ;;  %v859_v10 = vmul.f32 0.70710677, %v2241_v28  ;;  %v2245_v32 = vadd.f32 %v746_v44, %v2232_v7  ;;  %v827_v44 = vmul.f32 0.5, %v2241_v28 }
 0x1c5   : > { %v750_v33 = vpop.f32.mrf.mxu0 }
 0x1c6   : > { %1631 = verf.f32 %v859_v10  ;;  %v860_v49 = vmul.f32 0.70710677, %v2245_v32  ;;  %v2249_v25 = vadd.f32 %v750_v33, %v2230_v6  ;;  %v828_v57 = vmul.f32 0.5, %v2245_v32 }
 0x1c7   : > { %v1620_v1 = vpop.eup %1619  ;;  %v752_v15 = vpop.f32.mrf.mxu0 }
 0x1c8   : > { %1633 = verf.f32 %v860_v49  ;;  %v861_v55 = vmul.f32 0.70710677, %v2249_v25  ;;  %v2253_v35 = vadd.f32 %v752_v15, %v2232_v7  ;;  %v917_v37 = vadd.f32 1.0, %v1620_v1 }
 0x1c9   : > { %v1622_v36 = vpop.eup %1621  ;;  %v756_v59 = vpop.f32.mrf.mxu0  ;;  %v829_v28 = vmul.f32 0.5, %v2249_v25 }
 0x1ca   : > { %1635 = verf.f32 %v861_v55  ;;  %v862_v18 = vmul.f32 0.70710677, %v2253_v35  ;;  %v2257_v2 = vadd.f32 %v756_v59, %v2230_v6  ;;  %v918_v42 = vadd.f32 1.0, %v1622_v36 }
 0x1cb   : > { %v1624_v61 = vpop.eup %1623  ;;  %v758_v40 = vpop.f32.mrf.mxu0  ;;  %v949_v47 = vmul.f32 %v917_v37, %v821_v38 }
 0x1cc   : > { %1637 = verf.f32 %v862_v18  ;;  %v863_v51 = vmul.f32 0.70710677, %v2257_v2  ;;  %v2261_v45 = vadd.f32 %v758_v40, %v2232_v7  ;;  %v950_v46 = vmul.f32 %v918_v42, %v822_v63 }
 0x1cd   : > { %v1626_v0 = vpop.eup %1625  ;;  %v762_v14 = vpop.f32.mrf.mxu0  ;;  %v919_v13 = vadd.f32 1.0, %v1624_v61  ;;  %v830_v18 = vmul.f32 0.5, %v2253_v35 }
 0x1ce   : > { %1639 = verf.f32 %v863_v51  ;;  %v864_v48 = vmul.f32 0.70710677, %v2261_v45  ;;  %v2265_v23 = vadd.f32 %v762_v14, %v2230_v6  ;;  %1093 = vmatprep.mubr.f32.mxu1 %v950_v46  ;;  %v920_v56 = vadd.f32 1.0, %v1626_v0 }
 0x1cf   : > { %v1628_v50 = vpop.eup %1627  ;;  %v764_v54 = vpop.f32.mrf.mxu0  ;;  %1094 = vmatmul.mubr.f32.vlgmr.msra.gmra.mxu1 %v949_v47  ;;  %v951_v9 = vmul.f32 %v919_v13, %v823_v58 }
 0x1d0   : > { %1641 = verf.f32 %v864_v48  ;;  %v865_v4 = vmul.f32 0.70710677, %v2265_v23  ;;  %v2269_v31 = vadd.f32 %v764_v54, %v2232_v7  ;;  %v952_v3 = vmul.f32 %v920_v56, %v824_v53 }
 0x1d1   : > { %v1630_v60 = vpop.eup %1629  ;;  %v768_v62 = vpop.f32.mrf.mxu0  ;;  %v921_v29 = vadd.f32 1.0, %v1628_v50  ;;  %v832_v48 = vmul.f32 0.5, %v2261_v45  ;;  %v831_v53 = vmul.f32 0.5, %v2257_v2  ;;  %v833_v2 = vmul.f32 0.5, %v2265_v23 }
 0x1d2   : > { %1643 = verf.f32 %v865_v4  ;;  %v866_v30 = vmul.f32 0.70710677, %v2269_v31  ;;  %v2273_v5 = vadd.f32 %v768_v62, %v2230_v6  ;;  %1098 = vmatprep.mubr.f32.mxu1 %v952_v3  ;;  %v922_v17 = vadd.f32 1.0, %v1630_v60 }
 0x1d3   : > { %v1632_v11 = vpop.eup %1631  ;;  %v770_v16 = vpop.f32.mrf.mxu0  ;;  %1099 = vmatmul.mubr.f32.gmra.mxu1 %v951_v9  ;;  %v953_v22 = vmul.f32 %v921_v29, %v825_v8  ;;  %v834_v9 = vmul.f32 0.5, %v2269_v31 }
 0x1d4   : > { %1645 = verf.f32 %v866_v30  ;;  %v867_v19 = vmul.f32 0.70710677, %v2273_v5  ;;  %v2277_v34 = vadd.f32 %v770_v16, %v2232_v7  ;;  %v954_v21 = vmul.f32 %v922_v17, %v826_v41 }
 0x1d5   : > { %v1634_v43 = vpop.eup %1633  ;;  %v774_v20 = vpop.f32.mrf.mxu0  ;;  %v923_v12 = vadd.f32 1.0, %v1632_v11 }
 0x1d6   : > { %1647 = verf.f32 %v867_v19  ;;  %v868_v24 = vmul.f32 0.70710677, %v2277_v34  ;;  %v2281_v26 = vadd.f32 %v774_v20, %v2230_v6  ;;  %1103 = vmatprep.mubr.f32.mxu1 %v954_v21  ;;  %v924_v27 = vadd.f32 1.0, %v1634_v43 }
 0x1d7   : > { %v1636_v39 = vpop.eup %1635  ;;  %v776_v52 = vpop.f32.mrf.mxu0  ;;  %1104 = vmatmul.mubr.f32.gmra.mxu1 %v953_v22  ;;  %v955_v59 = vmul.f32 %v923_v12, %v827_v44 }
 0x1d8   : > { %1649 = verf.f32 %v868_v24  ;;  %v869_v10 = vmul.f32 0.70710677, %v2281_v26  ;;  %v2287_v33 = vadd.f32 %v776_v52, %v2232_v7  ;;  %v956_v15 = vmul.f32 %v924_v27, %v828_v57 }
 0x1d9   : > { %v1638_v49 = vpop.eup %1637  ;;  %v780_v1 = vpop.f32.mrf.mxu0  ;;  %v925_v55 = vadd.f32 1.0, %v1636_v39  ;;  %v836_v24 = vmul.f32 0.5, %v2277_v34  ;;  %v835_v57 = vmul.f32 0.5, %v2273_v5  ;;  %v837_v5 = vmul.f32 0.5, %v2281_v26 }
 0x1da   : > { %1651 = verf.f32 %v869_v10  ;;  %v870_v36 = vmul.f32 0.70710677, %v2287_v33  ;;  %v2291_v32 = vadd.f32 %v780_v1, %v2230_v6  ;;  %1108 = vmatprep.mubr.f32.mxu1 %v956_v15  ;;  %v926_v38 = vadd.f32 1.0, %v1638_v49 }
 0x1db   : > { %v1640_v37 = vpop.eup %1639  ;;  %v782_v61 = vpop.f32.mrf.mxu0  ;;  %1109 = vmatmul.mubr.f32.gmra.mxu1 %v955_v59  ;;  %v957_v14 = vmul.f32 %v925_v55, %v829_v28  ;;  %v838_v59 = vmul.f32 0.5, %v2287_v33 }
 0x1dc   : > { %1653 = verf.f32 %v870_v36  ;;  %v871_v40 = vmul.f32 0.70710677, %v2291_v32  ;;  %v2297_v63 = vadd.f32 %v782_v61, %v2232_v7  ;;  %v958_v0 = vmul.f32 %v926_v38, %v830_v18 }
 0x1dd   : > { %v1642_v42 = vpop.eup %1641  ;;  %v786_v51 = vpop.f32.mrf.mxu0  ;;  %v927_v35 = vadd.f32 1.0, %v1640_v37 }
 0x1de   : > { %1655 = verf.f32 %v871_v40  ;;  %v872_v46 = vmul.f32 0.70710677, %v2297_v63  ;;  %v2301_v25 = vadd.f32 %v786_v51, %v2230_v6  ;;  %1113 = vmatprep.mubr.f32.mxu1 %v958_v0  ;;  %v928_v50 = vadd.f32 1.0, %v1642_v42 }
 0x1df   : > { %v1644_v47 = vpop.eup %1643  ;;  %v788_v13 = vpop.f32.mrf.mxu0  ;;  %1114 = vmatmul.mubr.f32.gmra.mxu1 %v957_v14  ;;  %v959_v29 = vmul.f32 %v927_v35, %v831_v53 }
 0x1e0   : > { %1657 = verf.f32 %v872_v46  ;;  %v873_v54 = vmul.f32 0.70710677, %v2301_v25  ;;  %v2307_v56 = vadd.f32 %v788_v13, %v2232_v7  ;;  %v960_v60 = vmul.f32 %v928_v50, %v832_v48 }
 0x1e1   : > { %v1646_v58 = vpop.eup %1645  ;;  %v792_v4 = vpop.f32.mrf.mxu0  ;;  %v929_v62 = vadd.f32 1.0, %v1644_v47  ;;  %v840_v46 = vmul.f32 0.5, %v2297_v63  ;;  %v839_v48 = vmul.f32 0.5, %v2291_v32 }
 0x1e2   : > { %1659 = verf.f32 %v873_v54  ;;  %v874_v3 = vmul.f32 0.70710677, %v2307_v56  ;;  %v2311_v45 = vadd.f32 %v792_v4, %v2230_v6  ;;  %1118 = vmatprep.mubr.f32.mxu1 %v960_v60  ;;  %v930_v8 = vadd.f32 1.0, %v1646_v58 }
 0x1e3   : > { %v1648_v30 = vpop.eup %1647  ;;  %v794_v11 = vpop.f32.mrf.mxu0  ;;  %1119 = vmatmul.mubr.f32.gmra.mxu1 %v959_v29  ;;  %v961_v20 = vmul.f32 %v929_v62, %v833_v2  ;;  %v841_v29 = vmul.f32 0.5, %v2301_v25  ;;  %v842_v32 = vmul.f32 0.5, %v2307_v56 }
 0x1e4   : > { %1661 = verf.f32 %v874_v3  ;;  %v875_v41 = vmul.f32 0.70710677, %v2311_v45  ;;  %v2317_v16 = vadd.f32 %v794_v11, %v2232_v7  ;;  %v962_v43 = vmul.f32 %v930_v8, %v834_v9 }
 0x1e5   : > { %v1650_v17 = vpop.eup %1649  ;;  %v798_v19 = vpop.f32.mrf.mxu0  ;;  %v931_v31 = vadd.f32 1.0, %v1648_v30  ;;  %v843_v56 = vmul.f32 0.5, %v2311_v45 }
 0x1e6   : > { %1663 = verf.f32 %v875_v41  ;;  %v876_v21 = vmul.f32 0.70710677, %v2317_v16  ;;  %v2321_v23 = vadd.f32 %v798_v19, %v2230_v6  ;;  %1123 = vmatprep.mubr.f32.mxu1 %v962_v43  ;;  %v932_v39 = vadd.f32 1.0, %v1650_v17 }
 0x1e7   : > { %v1652_v22 = vpop.eup %1651  ;;  %v800_v12 = vpop.f32.mrf.mxu0  ;;  %1124 = vmatmul.mubr.f32.gmra.mxu1 %v961_v20  ;;  %v963_v55 = vmul.f32 %v931_v31, %v835_v57  ;;  %v844_v41 = vmul.f32 0.5, %v2317_v16 }
 0x1e8   : > { %1665 = verf.f32 %v876_v21  ;;  %v877_v52 = vmul.f32 0.70710677, %v2321_v23  ;;  %v2327_v27 = vadd.f32 %v800_v12, %v2232_v7  ;;  %v964_v49 = vmul.f32 %v932_v39, %v836_v24 }
 0x1e9   : > { %v1654_v44 = vpop.eup %1653  ;;  %v804_v10 = vpop.f32.mrf.mxu0  ;;  %v933_v1 = vadd.f32 1.0, %v1652_v22  ;;  %v845_v39 = vmul.f32 0.5, %v2321_v23 }
 0x1ea   : > { %1667 = verf.f32 %v877_v52  ;;  %v878_v15 = vmul.f32 0.70710677, %v2327_v27  ;;  %v2331_v34 = vadd.f32 %v804_v10, %v2230_v6  ;;  %1128 = vmatprep.mubr.f32.mxu1 %v964_v49  ;;  %v934_v28 = vadd.f32 1.0, %v1654_v44 }
 0x1eb   : > { %v1656_v36 = vpop.eup %1655  ;;  %v806_v37 = vpop.f32.mrf.mxu0  ;;  %1129 = vmatmul.mubr.f32.gmra.mxu1 %v963_v55  ;;  %v965_v51 = vmul.f32 %v933_v1, %v837_v5 }
 0x1ec   : > { %1669 = verf.f32 %v878_v15  ;;  %v879_v18 = vmul.f32 0.70710677, %v2331_v34  ;;  %v807_v61 = vadd.f32 %v806_v37, %v2232_v7  ;;  %v966_v42 = vmul.f32 %v934_v28, %v838_v59 }
 0x1ed   : > { %v1658_v38 = vpop.eup %1657  ;;  %v810_v40 = vpop.f32.mrf.mxu0  ;;  %v935_v26 = vadd.f32 1.0, %v1656_v36  ;;  %v847_v15 = vmul.f32 0.5, %v2331_v34 }
 0x1ee   : > { %1671 = verf.f32 %v879_v18  ;;  %v880_v0 = vmul.f32 0.70710677, %v807_v61  ;;  %v2338_v14 = vadd.f32 %v810_v40, %v2230_v6  ;;  %1133 = vmatprep.mubr.f32.mxu1 %v966_v42  ;;  %v936_v47 = vadd.f32 1.0, %v1658_v38 }
 0x1ef   : > { %v1660_v33 = vpop.eup %1659  ;;  %v812_v35 = vpop.f32.mrf.mxu0  ;;  %1134 = vmatmul.mubr.f32.gmra.mxu1 %v965_v51  ;;  %v967_v63 = vmul.f32 %v935_v26, %v839_v48  ;;  %v848_v44 = vmul.f32 0.5, %v807_v61 }
 0x1f0   : > { %1673 = verf.f32 %v880_v0  ;;  %v881_v13 = vmul.f32 0.70710677, %v2338_v14  ;;  %v813_v50 = vadd.f32 %v812_v35, %v2232_v7  ;;  %v968_v58 = vmul.f32 %v936_v47, %v840_v46 }
 0x1f1   : > { %v1662_v53 = vpop.eup %1661  ;;  %v816_v54 = vpop.f32.mrf.mxu0  ;;  %v937_v4 = vadd.f32 1.0, %v1660_v33  ;;  %v849_v28 = vmul.f32 0.5, %v2338_v14  ;;  %v2357_v14 = vld [vmem:[%s2454_s4] ss:$0 sm:$0xff] }
 0x1f2   : > { %1675 = verf.f32 %v881_v13  ;;  %v882_v60 = vmul.f32 0.70710677, %v813_v50  ;;  %v817_v62 = vadd.f32 %v816_v54, %v2230_v6  ;;  %1138 = vmatprep.mubr.f32.mxu1 %v968_v58  ;;  %v938_v2 = vadd.f32 1.0, %v1662_v53 }
 0x1f3   : > { %v1664_v3 = vpop.eup %1663  ;;  %v818_v30 = vpop.f32.mrf.mxu0  ;;  %1139 = vmatmul.mubr.f32.gmra.mxu1 %v967_v63  ;;  %v969_v19 = vmul.f32 %v937_v4, %v841_v29  ;;  %v850_v36 = vmul.f32 0.5, %v813_v50 }
 0x1f4   : > { %1677 = verf.f32 %v882_v60  ;;  %v883_v9 = vmul.f32 0.70710677, %v817_v62  ;;  %v819_v11 = vadd.f32 %v818_v30, %v2232_v7  ;;  %v970_v17 = vmul.f32 %v938_v2, %v842_v32 }
 0x1f5   : > { %v1666_v8 = vpop.eup %1665  ;;  %v939_v20 = vadd.f32 1.0, %v1664_v3  ;;  %v846_v7 = vmul.f32 0.5, %v2327_v27  ;;  %v851_v51 = vmul.f32 0.5, %v817_v62 }
 0x1f6   : > { %1679 = verf.f32 %v883_v9  ;;  %v884_v6 = vmul.f32 0.70710677, %v819_v11  ;;  %v940_v43 = vadd.f32 1.0, %v1666_v8  ;;  %1143 = vmatprep.mubr.f32.mxu1 %v970_v17  ;;  %v852_v38 = vmul.f32 0.5, %v819_v11 }
 0x1f7   : > { %v1668_v25 = vpop.eup %1667  ;;  %1144 = vmatmul.mubr.f32.gmra.mxu1 %v969_v19  ;;  %v971_v22 = vmul.f32 %v939_v20, %v843_v56 }
 0x1f8   : > { %1681 = verf.f32 %v884_v6  ;;  %v972_v21 = vmul.f32 %v940_v43, %v844_v41  ;;  %v941_v16 = vadd.f32 1.0, %v1668_v25 }
 0x1f9   : > { %v1670_v31 = vpop.eup %1669 }
 0x1fa   : > { %1148 = vmatprep.mubr.f32.mxu1 %v972_v21  ;;  %v942_v24 = vadd.f32 1.0, %v1670_v31  ;;  %v973_v10 = vmul.f32 %v941_v16, %v845_v39 }
 0x1fb   : > { %v1672_v12 = vpop.eup %1671  ;;  %1149 = vmatmul.mubr.f32.gmra.mxu1 %v971_v22 }
 0x1fc   : > { %v974_v57 = vmul.f32 %v942_v24, %v846_v7  ;;  %v943_v49 = vadd.f32 1.0, %v1672_v12 }
 0x1fd   : > { %v1674_v52 = vpop.eup %1673 }
 0x1fe   : > { %1153 = vmatprep.mubr.f32.mxu1 %v974_v57  ;;  %v944_v45 = vadd.f32 1.0, %v1674_v52  ;;  %v975_v5 = vmul.f32 %v943_v49, %v847_v15 }
 0x1ff   : > { %v1676_v1 = vpop.eup %1675  ;;  %1154 = vmatmul.mubr.f32.gmra.mxu1 %v973_v10 }
 0x200   : > { %v976_v27 = vmul.f32 %v944_v45, %v848_v44  ;;  %v945_v37 = vadd.f32 1.0, %v1676_v1 }
 0x201   : > { %v1678_v55 = vpop.eup %1677 }
 0x202   : > { %1158 = vmatprep.mubr.f32.mxu1 %v976_v27  ;;  %v946_v59 = vadd.f32 1.0, %v1678_v55  ;;  %v977_v40 = vmul.f32 %v945_v37, %v849_v28 }
 0x203   : > { %v1680_v23 = vpop.eup %1679  ;;  %1159 = vmatmul.mubr.f32.gmra.mxu1 %v975_v5 }
 0x204   : > { %v978_v18 = vmul.f32 %v946_v59, %v850_v36  ;;  %v947_v34 = vadd.f32 1.0, %v1680_v23 }
 0x205   : > { %v1682_v61 = vpop.eup %1681 }
 0x206   : > { %1163 = vmatprep.mubr.f32.mxu1 %v978_v18  ;;  %v948_v42 = vadd.f32 1.0, %v1682_v61  ;;  %v979_v26 = vmul.f32 %v947_v34, %v851_v51 }
 0x207   : > { %1164 = vmatmul.mubr.f32.gmra.mxu1 %v977_v40 }
 0x208   : > { %v980_v0 = vmul.f32 %v948_v42, %v852_v38 }
 0x20a   : > { %1168 = vmatprep.mubr.f32.mxu1 %v980_v0 }
 0x20b   : > { %1169 = vmatmul.mubr.f32.gmra.mxu1 %v979_v26 }
 0x28f   : > { %v1449_v33 = vpop.f32.mrf.mxu1 }
 0x291   : > { %v1450_v46 = vpop.f32.mrf.mxu1 }
 0x292   : > { %v1451_v35 = vadd.f32 %v1450_v46, %v1449_v33 }
 0x293   : > { %v1452_v47 = vpop.f32.mrf.mxu1 }
 0x294   : > { %v1232_v48 = vadd.f32 %v1451_v35, %v2357_v14 }
 0x295   : > { %v1453_v13 = vpop.f32.mrf.mxu1 }
 0x296   : > { %1248 = vst [vmem:[%s2362_s24] sm:$0xff] %v1232_v48  ;;  %v1454_v50 = vadd.f32 %v1453_v13, %v1452_v47 }
 0x297   : > { %v1455_v53 = vpop.f32.mrf.mxu1 }
 0x298   : > { %v1233_v54 = vadd.f32 %v1454_v50, %v2357_v14 }
 0x299   : > { %v1456_v58 = vpop.f32.mrf.mxu1 }
 0x29a   : > { %1249 = vst [vmem:[%s2362_s24 + $0x8] sm:$0xff] %v1233_v54  ;;  %v1457_v4 = vadd.f32 %v1456_v58, %v1455_v53 }
 0x29b   : > { %v1458_v60 = vpop.f32.mrf.mxu1 }
 0x29c   : > { %v1234_v62 = vadd.f32 %v1457_v4, %v2357_v14 }
 0x29d   : > { %v1459_v63 = vpop.f32.mrf.mxu1 }
 0x29e   : > { %1250 = vst [vmem:[%s2362_s24 + $0x10] sm:$0xff] %v1234_v62  ;;  %v1460_v3 = vadd.f32 %v1459_v63, %v1458_v60 }
 0x29f   : > { %v1461_v29 = vpop.f32.mrf.mxu1 }
 0x2a0   : > { %v1235_v32 = vadd.f32 %v1460_v3, %v2357_v14 }
 0x2a1   : > { %v1462_v30 = vpop.f32.mrf.mxu1 }
 0x2a2   : > { %1251 = vst [vmem:[%s2362_s24 + $0x18] sm:$0xff] %v1235_v32  ;;  %v1463_v2 = vadd.f32 %v1462_v30, %v1461_v29 }
 0x2a3   : > { %v1464_v9 = vpop.f32.mrf.mxu1 }
 0x2a4   : > { %v1236_v11 = vadd.f32 %v1463_v2, %v2357_v14 }
 0x2a5   : > { %v1465_v8 = vpop.f32.mrf.mxu1 }
 0x2a6   : > { %1252 = vst [vmem:[%s2362_s24 + $0x20] sm:$0xff] %v1236_v11  ;;  %v1466_v41 = vadd.f32 %v1465_v8, %v1464_v9 }
 0x2a7   : > { %v1467_v17 = vpop.f32.mrf.mxu1 }
 0x2a8   : > { %v1237_v19 = vadd.f32 %v1466_v41, %v2357_v14 }
 0x2a9   : > { %v1468_v6 = vpop.f32.mrf.mxu1 }
 0x2aa   : > { %1253 = vst [vmem:[%s2362_s24 + $0x28] sm:$0xff] %v1237_v19  ;;  %v1469_v43 = vadd.f32 %v1468_v6, %v1467_v17 }
 0x2ab   : > { %v1470_v20 = vpop.f32.mrf.mxu1 }
 0x2ac   : > { %v1238_v25 = vadd.f32 %v1469_v43, %v2357_v14 }
 0x2ad   : > { %v1471_v56 = vpop.f32.mrf.mxu1 }
 0x2ae   : > { %1254 = vst [vmem:[%s2362_s24 + $0x30] sm:$0xff] %v1238_v25  ;;  %v1472_v21 = vadd.f32 %v1471_v56, %v1470_v20 }
 0x2af   : > { %v1473_v31 = vpop.f32.mrf.mxu1 }
 0x2b0   : > { %v1239_v7 = vadd.f32 %v1472_v21, %v2357_v14 }
 0x2b1   : > { %v1474_v22 = vpop.f32.mrf.mxu1 }
 0x2b2   : > { %1255 = vst [vmem:[%s2362_s24 + $0x38] sm:$0xff] %v1239_v7  ;;  %v1475_v24 = vadd.f32 %v1474_v22, %v1473_v31 }
 0x2b3   : > { %v1476_v16 = vpop.f32.mrf.mxu1 }
 0x2b4   : > { %v1240_v12 = vadd.f32 %v1475_v24, %v2357_v14 }
 0x2b5   : > { %v1477_v39 = vpop.f32.mrf.mxu1 }
 0x2b6   : > { %1256 = vst [vmem:[%s2362_s24 + $0x40] sm:$0xff] %v1240_v12  ;;  %v1478_v57 = vadd.f32 %v1477_v39, %v1476_v16 }
 0x2b7   : > { %v1479_v52 = vpop.f32.mrf.mxu1 }
 0x2b8   : > { %v1241_v44 = vadd.f32 %v1478_v57, %v2357_v14 }
 0x2b9   : > { %v1480_v10 = vpop.f32.mrf.mxu1 }
 0x2ba   : > { %1257 = vst [vmem:[%s2362_s24 + $0x48] sm:$0xff] %v1241_v44  ;;  %v1481_v45 = vadd.f32 %v1480_v10, %v1479_v52 }
 0x2bb   : > { %v1482_v49 = vpop.f32.mrf.mxu1 }
 0x2bc   : > { %v1242_v1 = vadd.f32 %v1481_v45, %v2357_v14 }
 0x2bd   : > { %v1483_v15 = vpop.f32.mrf.mxu1 }
 0x2be   : > { %1258 = vst [vmem:[%s2362_s24 + $0x50] sm:$0xff] %v1242_v1  ;;  %v1484_v27 = vadd.f32 %v1483_v15, %v1482_v49 }
 0x2bf   : > { %v1485_v55 = vpop.f32.mrf.mxu1 }
 0x2c0   : > { %v1243_v36 = vadd.f32 %v1484_v27, %v2357_v14 }
 0x2c1   : > { %v1486_v5 = vpop.f32.mrf.mxu1 }
 0x2c2   : > { %1259 = vst [vmem:[%s2362_s24 + $0x58] sm:$0xff] %v1243_v36  ;;  %v1487_v59 = vadd.f32 %v1486_v5, %v1485_v55 }
 0x2c3   : > { %v1488_v37 = vpop.f32.mrf.mxu1 }
 0x2c4   : > { %v1244_v23 = vadd.f32 %v1487_v59, %v2357_v14 }
 0x2c5   : > { %v1489_v28 = vpop.f32.mrf.mxu1 }
 0x2c6   : > { %1260 = vst [vmem:[%s2362_s24 + $0x60] sm:$0xff] %v1244_v23  ;;  %v1490_v18 = vadd.f32 %v1489_v28, %v1488_v37 }
 0x2c7   : > { %v1491_v61 = vpop.f32.mrf.mxu1 }
 0x2c8   : > { %v1245_v38 = vadd.f32 %v1490_v18, %v2357_v14 }
 0x2c9   : > { %v1492_v40 = vpop.f32.mrf.mxu1 }
 0x2ca   : > { %1261 = vst [vmem:[%s2362_s24 + $0x68] sm:$0xff] %v1245_v38  ;;  %v1493_v42 = vadd.f32 %v1492_v40, %v1491_v61 }
 0x2cb   : > { %v1494_v34 = vpop.f32.mrf.mxu1 }
 0x2cc   : > { %v1246_v51 = vadd.f32 %v1493_v42, %v2357_v14 }
 0x2cd   : > { %v1495_v0 = vpop.f32.mrf.mxu1 }
 0x2ce   : > { %1262 = vst [vmem:[%s2362_s24 + $0x70] sm:$0xff] %v1246_v51  ;;  %v1496_v26 = vadd.f32 %v1495_v0, %v1494_v34 }
 0x2d0   : > { %v1247_v33 = vadd.f32 %v1496_v26, %v2357_v14 }
 0x2d2   : > { %1263 = vst [vmem:[%s2362_s24 + $0x78] sm:$0xff] %v1247_v33 }
 0x2d3   : > { %1776 = shalt.err (!%p1773_p5)
}
 0x2d4   : > { %s1777_s6 = scalar_lea.hbm %s2398_s13, 2048  ;;  %s1781_s30 = scalar_lea.hbm %s2455_s5, 4096 }
 0x2d5   : > { %p1778_p10 = scmp.ne.s32.totalorder %s2398_s13, %s1777_s6  ;;  %p1782_p6 = scmp.lt.s32.totalorder %s2398_s13, %s2455_s5 }
 0x2d6   : > { %p1783_p12 = scmp.lt.s32.totalorder %s1781_s30, %s1777_s6 }
 0x2d7   : > { %p1779_p1 = pnand %p1778_p10, %p1988_p7 }
 0x2d8   : > { %p1784_p3 = por %p1783_p12, %p1782_p6 }
 0x2d9   : > { %p1780_p4 = pneg %p1779_p1 }
 0x2db   : > { %p1785_p8 = pnand %p1784_p3, %p1780_p4 }
 0x2dd   : > { %1788 = shalt.err (!%p1785_p8)
}
 0x2de   : > { %s1858_s25 = smov 128   ;;  %s1859_s11 = smov 8  }
 0x2df   : > { %1507 = dma.vmem_to_hbm [thread:$0]  (%p1988_p7), %s2400_s27, 2048, %s2398_s13, %s1265_s10, %s1858_s25, %s1858_s25, %s1859_s11  }
 0x2e0 PF: > { %s1293_s9 = sand.u32 1, %s1827_s18   ;;  %p2475_p9 = scmp.ne.s32.totalorder %s2465_s29, 0 }
 0x2e1   : > { %p2476_p11 = scmp.ge.s32.totalorder %s1847_s23, 2  ;;  %s1294_s15 = scalar_lea.sflag [#allocation6], %s1293_s9 }
 0x2e3   : > { %p1521_p2 = pnand %p2476_p11, %p2475_p9 }
 0x2e5   : > { %p1522_p13 = pneg %p1521_p2 }
 0x2e7   : > { %1822 = dma.done.wait (%p1522_p13), %s1294_s15, 2048  }
 0x2e8   : > { %1824 = vsyncadd (%p1522_p13), %s1294_s15, 4294965248  ;;  %s22_s23 = sadd.s32 1, %s1847_s23   ;;  %s2477_s18 = smov %s1831_s19 }
 0x2e9   : > { %p19_p0 = scmp.ge.s32.totalorder %s22_s23, 4   ;;  %s2478_s19 = smov %s1835_s20 }
 0x2ea   : > { %s2479_s20 = smov %s1997_s14  ;;  %s2480_s21 = smov %s1843_s22 }
 0x2eb   : > { %s2481_s22 = smov %s2483_s7  ;;  %21 = sbr.rel (!%p19_p0) target bundleno = 9 (0x9), region = 106 }
 0x2f0   :  { %1299 = vsyncpa [#allocation5], 1 }
 0x2f1   :  { %1301 = vsyncpa [#allocation5 + $0x1], 1 }
 0x2f2   :  { %1302 = vsyncpa [#allocation8], 1 }
 0x2f3   :  { %1303 = vsyncpa [#allocation6], 1 }
 0x2f4   :  { %1305 = vsyncpa [#allocation6 + $0x1], 1 }

</bundles_post_ra>
